<compile_context>
chip_gen: v7x
topology: tpu7x:2x2x1
jax: 0.10.0
libtpu: 0.0.40
codegen_flags: <defaults>
</compile_context>

<pallas_src>
import jax
import jax.numpy as jnp
from jax.experimental import pallas as pl
from jax.experimental.pallas import tpu as pltpu


def _round_up(x, m):
    return ((x + m - 1) // m) * m


def _closest_negative_kernel(fd_ref, neg_ref, out_ref):
    """One row-tile of the D3Feat closest-negative reduction.

    fd_ref  : (TM, N) feature distances (native dtype)
    neg_ref : (TM, N) int8 negative mask (coordinate_distance > neg_radius)
    out_ref : (1, TM) per-anchor closest-negative feature distance (f32)
    """
    fd = fd_ref[...]
    is_neg = neg_ref[...] != 0
    # Bit-identical to the reference's  fd + 100000 * (~neg_mask):
    masked = jnp.where(is_neg, fd, fd + jnp.asarray(100000.0, fd.dtype))
    cn = jnp.min(masked, axis=1)                     # (TM,) lane reduction
    out_ref[...] = cn.astype(out_ref.dtype).reshape(1, -1)


def _vmem_limit_bytes():
    try:
        cap = int(pltpu.get_tpu_info().vmem_capacity_bytes)
    except Exception:
        cap = 64 << 20                 # conservative: v7x per-TensorCore VMEM
    # ~96 MiB on v5e/v6e (128 MiB physical), ~48 MiB on v7x (64 MiB physical).
    return int(min(cap * 3 // 4, 112 << 20))


def _choose_row_tile(n, itemsize, vmem_limit):
    # Resident per anchor row: double-buffered fd block + double-buffered int8
    # mask block + ~2 f32-width temporaries for the select / running min.
    per_row = n * (2 * itemsize + 2 * 1 + 2 * 4)
    budget = (vmem_limit * 3) // 4                 # headroom inside the limit
    tm_cap = max(32, ((budget // per_row) // 32) * 32)
    n_pad32 = _round_up(n, 32)
    if tm_cap >= n_pad32:
        if n_pad32 >= 1024:
            # >=2 grid steps so dimension_semantics=("parallel",) can shard
            # row tiles across both TensorCores on v7x; keep tiles lane-aligned.
            return _round_up((n_pad32 + 1) // 2, 128)
        return n_pad32                  # small problem: single grid step
    # Streaming case: lane-aligned tile (multiple of 128 keeps the (1, TM)
    # lane-dense output block legal), capped at 1024 rows.
    # TODO(synk): add column tiling for extreme N where even 128 rows x N
    # columns exceeds the VMEM budget.
    return int(min(1024, max(128, (tm_cap // 128) * 128)))


def detection_loss(coordinate_distances, feature_distances, scores0, scores1,
                   pos_radius=0.015, neg_radius=0.1, row_tile=None):
    """Forward pass of D3Feat's DetectionLoss (mean over anchors)."""
    del pos_radius  # unused by the reference forward pass (kept for parity)
    n = feature_distances.shape[0]
    fd = feature_distances

    # Reviewed fallback byte reduction (raw points unavailable here): build the
    # int8 negative mask once so the kernel streams fd + i8 mask, not fd + cd.
    neg_mask = (coordinate_distances >
                jnp.asarray(neg_radius, coordinate_distances.dtype)
                ).astype(jnp.int8)

    vmem_limit = _vmem_limit_bytes()
    if row_tile is not None:
        tm = _round_up(int(row_tile), 32)
        if _round_up(n, tm) > tm:       # multi-step: lane-align the out block
            tm = _round_up(tm, 128)
    else:
        tm = _choose_row_tile(n, jnp.dtype(fd.dtype).itemsize, vmem_limit)

    n_pad = _round_up(n, tm)
    pad = n_pad - n
    if pad:
        # Padded anchor rows produce finite values that are sliced off below;
        # columns are never padded.
        fd = jnp.pad(fd, ((0, pad), (0, 0)))
        neg_mask = jnp.pad(neg_mask, ((0, pad), (0, 0)))

    grid = (n_pad // tm,)
    cn_all = pl.pallas_call(
        _closest_negative_kernel,
        out_shape=jax.ShapeDtypeStruct((1, n_pad), jnp.float32),
        grid=grid,
        in_specs=[
            pl.BlockSpec((tm, n), lambda i: (i, 0)),      # fd row tile (f32/bf16)
            pl.BlockSpec((tm, n), lambda i: (i, 0)),      # int8 negative mask
        ],
        out_specs=pl.BlockSpec((1, tm), lambda i: (0, i)),   # lane-dense
        compiler_params=pltpu.CompilerParams(
            dimension_semantics=("parallel",),
            vmem_limit_bytes=vmem_limit),
    )(fd, neg_mask)

    closest_negative = cn_all[0, :n]
    # pos_mask is the identity -> furthest_positive is exactly diag(fd)
    # (same fd < 1e5 assumption the reference's additive masking makes).
    furthest_positive = jnp.diagonal(feature_distances).astype(jnp.float32)
    scores = scores0.astype(jnp.float32) + scores1.astype(jnp.float32)
    return jnp.mean((furthest_positive - closest_negative) * scores)


def _reference(cd, fd, s0, s1, neg_radius):
    n = fd.shape[0]
    idx = jnp.arange(n)
    pos_mask = idx[:, None] == idx[None, :]
    neg_mask = cd > neg_radius
    fp = jnp.max(fd - 100000.0 * (~pos_mask).astype(jnp.float32), axis=1)
    cn = jnp.min(fd + 100000.0 * (~neg_mask).astype(jnp.float32), axis=1)
    return jnp.mean((fp - cn) * (s0 + s1))


if __name__ == "__main__":
    N = 200            # non-multiple of the tile size: exercises row padding
    NEG_RADIUS = 0.1

    key = jax.random.PRNGKey(0)
    k1, k2, k3, k4 = jax.random.split(key, 4)

    # synthetic pairwise coordinate distances (symmetric, ~zero diagonal)
    pts = jax.random.uniform(k1, (N, 3), dtype=jnp.float32)
    coordinate_distances = jnp.sqrt(
        jnp.sum((pts[:, None, :] - pts[None, :, :]) ** 2, axis=-1) + 1e-12)
    # synthetic feature distances and per-point scores
    feature_distances = jax.random.uniform(k2, (N, N), dtype=jnp.float32) * 2.0
    scores0 = jax.random.uniform(k3, (N,), dtype=jnp.float32)
    scores1 = jax.random.uniform(k4, (N,), dtype=jnp.float32)

    loss = detection_loss(coordinate_distances, feature_distances,
                          scores0, scores1, neg_radius=NEG_RADIUS)
    loss = jax.block_until_ready(loss)

    ref = _reference(coordinate_distances, feature_distances,
                     scores0, scores1, NEG_RADIUS)
    assert jnp.allclose(loss, ref, rtol=1e-5, atol=1e-5), (loss, ref)

    print("KERNEL_OK")
</pallas_src>

<mosaic_0001>
module attributes {stable_mosaic.version = 11 : i64} {
  func.func @_closest_negative_kernel(%arg0: i32, %arg1: memref<224x200xf32, #tpu.memory_space<vmem>>, %arg2: memref<224x200xi8, #tpu.memory_space<vmem>>, %arg3: memref<1x224xf32, #tpu.memory_space<vmem>>) attributes {dimension_semantics = [#tpu.dimension_semantics<parallel>], iteration_bounds = array<i64: 1>, scalar_prefetch = 0 : i64, scratch_operands = 0 : i64, tpu.core_type = #tpu.core_type<tc>, window_params = [{transform_indices = @transform_0, window_bounds = array<i64: 224, 200>}, {transform_indices = @transform_1, window_bounds = array<i64: 224, 200>}, {transform_indices = @transform_2, window_bounds = array<i64: 1, 224>}]} {
    %c0 = arith.constant 0 : index
    %c0_0 = arith.constant 0 : index
    %0 = vector.load %arg1[%c0, %c0_0] : memref<224x200xf32, #tpu.memory_space<vmem>>, vector<224x200xf32>
    %c0_1 = arith.constant 0 : index
    %c0_2 = arith.constant 0 : index
    %1 = vector.load %arg2[%c0_1, %c0_2] : memref<224x200xi8, #tpu.memory_space<vmem>>, vector<224x200xi8>
    %c0_i8 = arith.constant 0 : i8
    %2 = vector.broadcast %c0_i8 : i8 to vector<224x200xi8>
    %3 = arith.cmpi ne, %1, %2 : vector<224x200xi8>
    %cst = arith.constant 1.000000e+05 : f32
    %4 = vector.broadcast %cst : f32 to vector<224x200xf32>
    %5 = arith.addf %0, %4 : vector<224x200xf32>
    %6 = arith.select %3, %0, %5 : vector<224x200xi1>, vector<224x200xf32>
    %cst_3 = arith.constant dense<0x7F800000> : vector<224xf32>
    %7 = vector.multi_reduction <minimumf>, %6, %cst_3 [1] : vector<224x200xf32> to vector<224xf32>
    %8 = vector.shape_cast %7 : vector<224xf32> to vector<1x224xf32>
    %c0_4 = arith.constant 0 : index
    %c0_5 = arith.constant 0 : index
    %9 = vector.load %arg3[%c0_4, %c0_5] : memref<1x224xf32, #tpu.memory_space<vmem>>, vector<1x224xf32>
    tpu.vector_store %arg3[%c0_4, %c0_5], %8 {strides = array<i32>} : memref<1x224xf32, #tpu.memory_space<vmem>>, vector<1x224xf32>,
    return
  }
  func.func @transform_0(%arg0: i32) -> (i32, i32) {
    %c0_i32 = arith.constant 0 : i32
    %c0_i32_0 = arith.constant 0 : i32
    return %arg0, %c0_i32 : i32, i32
  }
  func.func @transform_1(%arg0: i32) -> (i32, i32) {
    %c0_i32 = arith.constant 0 : i32
    %c0_i32_0 = arith.constant 0 : i32
    return %arg0, %c0_i32 : i32, i32
  }
  func.func @transform_2(%arg0: i32) -> (i32, i32) {
    %c0_i32 = arith.constant 0 : i32
    %c0_i32_0 = arith.constant 0 : i32
    return %c0_i32, %arg0 : i32, i32
  }
}

</mosaic_0001>

<bundles_post_ra>
// kernel: tpu_custom_call.1
= control target key start
LH: loop header
LB: loop body
LE: loop exit
PB: predicated region body
PF: predicated region fallthrough
CT: control target
= control target key end

     0   :  { %v3231_v6 = vmov 0   ;;  %vm504_vm2 = vcmask 588800   ;;  %s4382_s0 = inlined_call_operand.vmem [shape: f32[224,200], index: 0, kind: input, shape index: {}]   ;;  %s4383_s1 = inlined_call_operand.vmem [shape: s8[224,200], index: 1, kind: input, shape index: {}]   ;;  %s4384_s2 = inlined_call_operand.hbm [shape: f32[1,224], index: 2, kind: output, shape index: {}]  }
   0x1   :  { %v3252_v0 = vld [vmem:[%s4382_s0 + $0x20] sm:$0xff]  ;;  %v3257_v1 = vld [vmem:[%s4382_s0 + $0x28] sm:$0xff]  ;;  %3205 = vset.pattern.permute.xlu0 %v3231_v6  ;;  %3206 = vset.pattern.permute.xlu1 %v3231_v6  ;;  %v3287_v10 = vld [vmem:[%s4382_s0 + $0x30] sm:$0xff] }
   0x2   :  { %v70_v2 = vld [vmem:[%s4383_s1] sm:$0xff]  ;;  %v71_v3 = vld [vmem:[%s4383_s1 + $0x8] sm:$0xff]  ;;  %v3278_v7 = vadd.f32 100000.0, %v3252_v0  ;;  %v3281_v8 = vadd.f32 100000.0, %v3257_v1  ;;  %v3292_v11 = vld [vmem:[%s4382_s0 + $0x38] sm:$0xff]  ;;  %v3316_v24 = vadd.f32 100000.0, %v3287_v10 }
   0x3   :  { %vm84_vm0 = vnez %v70_v2  ;;  %v3268_v4 = vld [vmem:[%s4382_s0] sm:$0xff]  ;;  %v3273_v5 = vld [vmem:[%s4382_s0 + $0x8] sm:$0xff]  ;;  %vm85_vm1 = vnez %v71_v3  ;;  %v3301_v16 = vld [vmem:[%s4382_s0 + $0x10] sm:$0xff]  ;;  %v3319_v25 = vadd.f32 100000.0, %v3292_v11 }
   0x4   :  { %v154_v9 = vsel %vm84_vm0, 16843009, %v3231_v6  ;;  %v155_v12 = vsel %vm85_vm1, 16843009, %v3231_v6  ;;  %v3296_v14 = vadd.f32 100000.0, %v3268_v4  ;;  %v99_v18 = vadd.f32 100000.0, %v3273_v5 }
   0x5   :  { %v172_v13 = vunpack.c.2.s8 %v154_v9  ;;  %v168_v15 = vunpack.c.0.s8 %v154_v9  ;;  %v173_v17 = vunpack.c.2.s8 %v155_v12  ;;  %v169_v19 = vunpack.c.0.s8 %v155_v12  ;;  %v3307_v21 = vld [vmem:[%s4382_s0 + $0x18] sm:$0xff]  ;;  %v72_v22 = vld [vmem:[%s4383_s1 + $0x10] sm:$0xff] }
   0x6   :  { %v174_v20 = vunpack.c.3.s8 %v154_v9  ;;  %v73_v23 = vld [vmem:[%s4383_s1 + $0x18] sm:$0xff]  ;;  %v175_v26 = vunpack.c.3.s8 %v155_v12  ;;  %v170_v27 = vunpack.c.1.s8 %v154_v9  ;;  %v171_v30 = vunpack.c.1.s8 %v155_v12  ;;  %v3324_v31 = vld [vmem:[%s4382_s0 + $0x50] sm:$0xff] }
   0x7   :  { %v228_v28 = vpack.c.b16 %v173_v17, %v172_v13  ;;  %v224_v29 = vpack.c.b16 %v169_v19, %v168_v15  ;;  %vm86_vm3 = vnez %v72_v22  ;;  %v3327_v33 = vadd.f32 100000.0, %v3301_v16  ;;  %v3335_v38 = vld [vmem:[%s4382_s0 + $0x58] sm:$0xff]  ;;  %v3384_v13 = vld [vmem:[%s4382_s0 + $0x40] sm:$0xff] }
   0x8   :  { %v230_v32 = vpack.c.b16 %v175_v26, %v174_v20  ;;  %v3330_v34 = vadd.f32 100000.0, %v3307_v21  ;;  %vm87_vm4 = vnez %v73_v23  ;;  %v226_v37 = vpack.c.b16 %v171_v30, %v170_v27  ;;  %v3401_v26 = vld [vmem:[%s4382_s0 + $0x70] sm:$0xff]  ;;  %v3406_v27 = vld [vmem:[%s4382_s0 + $0x78] sm:$0xff] }
   0x9   :  { %v229_v35 = vpack.c.b8 %v228_v28, %v228_v28  ;;  %v225_v36 = vpack.c.b8 %v224_v29, %v224_v29  ;;  %v3338_v39 = vsel %vm86_vm3, 16843009, %v3231_v6  ;;  %v3341_v41 = vadd.f32 100000.0, %v3324_v31 }
   0xa   :  { %v231_v40 = vpack.c.b8 %v230_v32, %v230_v32  ;;  %v3344_v42 = vsel %vm87_vm4, 16843009, %v3231_v6  ;;  %v178_v43 = vunpack.c.1.s8 %v3338_v39  ;;  %v227_v44 = vpack.c.b8 %v226_v37, %v226_v37 }
   0xb   :  { %vm282_vm5 = vnez %v229_v35  ;;  %vm280_vm6 = vnez %v225_v36  ;;  %v179_v45 = vunpack.c.1.s8 %v3344_v42  ;;  %v3351_v48 = vadd.f32 100000.0, %v3335_v38  ;;  %v79_v35 = vld [vmem:[%s4383_s1 + $0x48] sm:$0xff] }
   0xc   :  { %v310_v46 = vsel %vm282_vm5, 16843009, %v3231_v6  ;;  %v308_v47 = vsel %vm280_vm6, 16843009, %v3231_v6  ;;  %vm283_vm7 = vnez %v231_v40  ;;  %vm3354_vm8 = vnez %v227_v44 }
   0xd   :  { %v340_v49 = vunpack.c.0.s8 %v310_v46  ;;  %v341_v50 = vunpack.c.1.s8 %v310_v46  ;;  %v336_v51 = vunpack.c.0.s8 %v308_v47  ;;  %v337_v52 = vunpack.c.1.s8 %v308_v47 }
   0xe   :  { %v311_v53 = vsel %vm283_vm7, 16843009, %v3231_v6  ;;  %v234_v55 = vpack.c.b16 %v179_v45, %v178_v43  ;;  %v176_v56 = vunpack.c.0.s8 %v3338_v39  ;;  %v182_v29 = vunpack.c.3.s8 %v3338_v39 }
   0xf   :  { %vm396_vm9 = vcmp.ne.s32.totalorder %v340_v49, 0  ;;  %vm397_vm10 = vcmp.ne.s32.totalorder %v341_v50, 0  ;;  %vm392_vm11 = vcmp.ne.s32.totalorder %v336_v51, 0  ;;  %vm393_vm12 = vcmp.ne.s32.totalorder %v337_v52, 0 }
  0x10   :  { %v452_v57 = vsel %vm396_vm9, %v3252_v0, %v3278_v7  ;;  %v453_v58 = vsel %vm397_vm10, %v3257_v1, %v3281_v8  ;;  %v448_v59 = vsel %vm392_vm11, %v3268_v4, %v3296_v14  ;;  %v449_v60 = vsel %vm393_vm12, %v3273_v5, %v99_v18 }
  0x11   :  { %v513_v61 = vsel %vm504_vm2, %v453_v58, inf  ;;  %v505_v62 = vsel %vm504_vm2, %v449_v60, inf  ;;  %v342_v63 = vunpack.c.0.s8 %v311_v53  ;;  %v343_v2 = vunpack.c.1.s8 %v311_v53 }
  0x12   :  { %v514_v3 = vmin.f32 %v452_v57, %v513_v61  ;;  %v506_v9 = vmin.f32 %v448_v59, %v505_v62  ;;  %v309_v0 = vsel %vm3354_vm8, 16843009, %v3231_v6  ;;  %v235_v7 = vpack.c.b8 %v234_v55, %v234_v55 }
  0x13   :  { %vm3371_vm13 = vcmp.ne.s32.totalorder %v342_v63, 0  ;;  %vm399_vm14 = vcmp.ne.s32.totalorder %v343_v2, 0  ;;  %v338_v4 = vunpack.c.0.s8 %v309_v0  ;;  %v339_v5 = vunpack.c.1.s8 %v309_v0 }
  0x14   :  { %515 = vmin.xlane.f32.xlu1 %v514_v3  ;;  %507 = vmin.xlane.f32.xlu0 %v506_v9  ;;  %v454_v8 = vsel %vm3371_vm13, %v3287_v10, %v3316_v24  ;;  %v455_v12 = vsel %vm399_vm14, %v3292_v11, %v3319_v25  ;;  %vm285_vm15 = vnez %v235_v7  ;;  %v177_v14 = vunpack.c.0.s8 %v3344_v42  ;;  %v23_v10 = vld [vmem:[%s4382_s0 + $0x48] sm:$0xff] }
  0x15   :  { %v517_v15 = vsel %vm504_vm2, %v455_v12, inf  ;;  %vm394_vm0 = vcmp.ne.s32.totalorder %v338_v4, 0  ;;  %vm395_vm1 = vcmp.ne.s32.totalorder %v339_v5, 0  ;;  %v313_v17 = vsel %vm285_vm15, 16843009, %v3231_v6 }
  0x16   :  { %v518_v18 = vmin.f32 %v454_v8, %v517_v15  ;;  %v450_v11 = vsel %vm394_vm0, %v3301_v16, %v3327_v33  ;;  %v451_v19 = vsel %vm395_vm1, %v3307_v21, %v3330_v34  ;;  %v346_v20 = vunpack.c.0.s8 %v313_v17  ;;  %v78_v34 = vld [vmem:[%s4383_s1 + $0x40] sm:$0xff] }
  0x17   :  { %v509_v22 = vsel %vm504_vm2, %v451_v19, inf  ;;  %v347_v23 = vunpack.c.1.s8 %v313_v17  ;;  %v106_v24 = vadd.f32 100000.0, %v3384_v13  ;;  %v232_v25 = vpack.c.b16 %v177_v14, %v176_v56 }
  0x18   :  { %519 = vmin.xlane.f32.xlu1 %v518_v18  ;;  %v510_v16 = vmin.f32 %v450_v11, %v509_v22  ;;  %vm3408_vm3 = vcmp.ne.s32.totalorder %v346_v20, 0  ;;  %v107_v28 = vadd.f32 100000.0, %v23_v10  ;;  %v183_v33 = vunpack.c.3.s8 %v3344_v42 }
  0x19   :  { %vm403_vm4 = vcmp.ne.s32.totalorder %v347_v23, 0  ;;  %v458_v30 = vsel %vm3408_vm3, %v3324_v31, %v3341_v41  ;;  %v233_v32 = vpack.c.b8 %v232_v25, %v232_v25  ;;  %v112_v37 = vadd.f32 100000.0, %v3401_v26 }
  0x1a   :  { %511 = vmin.xlane.f32.xlu0 %v510_v16  ;;  %v459_v36 = vsel %vm403_vm4, %v3335_v38, %v3351_v48  ;;  %v113_v40 = vadd.f32 100000.0, %v3406_v27  ;;  %v180_v31 = vunpack.c.2.s8 %v3338_v39 }
  0x1b   :  { %7 = vsyncpa [#allocation3], 0  ;;  %v525_v41 = vsel %vm504_vm2, %v459_v36, inf  ;;  %vm284_vm5 = vnez %v233_v32  ;;  %v238_v43 = vpack.c.b16 %v183_v33, %v182_v29  ;;  %v26_v44 = vld [vmem:[%s4382_s0 + $0x60] sm:$0xff]  ;;  %v27_v45 = vld [vmem:[%s4382_s0 + $0x68] sm:$0xff]  ;;  %v181_v38 = vunpack.c.2.s8 %v3344_v42 }
  0x1c   :  { %v526_v46 = vmin.f32 %v458_v30, %v525_v41  ;;  %v312_v47 = vsel %vm284_vm5, 16843009, %v3231_v6  ;;  %vm92_vm6 = vnez %v78_v34  ;;  %vm93_vm7 = vnez %v79_v35  ;;  %v74_v55 = vld [vmem:[%s4383_s1 + $0x20] sm:$0xff]  ;;  %v75_v63 = vld [vmem:[%s4383_s1 + $0x28] sm:$0xff]  ;;  %v3510_v41 = vld [vmem:[%s4382_s0 + $0x118] sm:$0xff] }
  0x1d   :  { %v344_v39 = vunpack.c.0.s8 %v312_v47  ;;  %v345_v48 = vunpack.c.1.s8 %v312_v47  ;;  %v239_v49 = vpack.c.b8 %v238_v43, %v238_v43  ;;  %v236_v50 = vpack.c.b16 %v181_v38, %v180_v31  ;;  %v3458_v9 = vld [vmem:[%s4382_s0 + $0x100] sm:$0xff]  ;;  %v47_v8 = vld [vmem:[%s4382_s0 + $0x108] sm:$0xff] }
  0x1e   :  { %527 = vmin.xlane.f32.xlu1 %v526_v46  ;;  %v110_v51 = vadd.f32 100000.0, %v26_v44  ;;  %v111_v52 = vadd.f32 100000.0, %v27_v45  ;;  %v3439_v53 = vsel %vm92_vm6, 16843009, %v3231_v6  ;;  %v3442_v54 = vsel %vm93_vm7, 16843009, %v3231_v6 }
  0x1f   :  { %vm400_vm8 = vcmp.ne.s32.totalorder %v344_v39, 0  ;;  %vm401_vm9 = vcmp.ne.s32.totalorder %v345_v48, 0  ;;  %vm287_vm10 = vnez %v239_v49  ;;  %v237_v42 = vpack.c.b8 %v236_v50, %v236_v50  ;;  %v3471_v11 = vld [vmem:[%s4382_s0 + $0x80] sm:$0xff]  ;;  %v3476_v19 = vld [vmem:[%s4382_s0 + $0x88] sm:$0xff] }
  0x20   :  { %v456_v56 = vsel %vm400_vm8, %v3384_v13, %v106_v24  ;;  %v457_v57 = vsel %vm401_vm9, %v23_v10, %v107_v28  ;;  %v315_v58 = vsel %vm287_vm10, 16843009, %v3231_v6  ;;  %v200_v59 = vunpack.c.0.s8 %v3439_v53  ;;  %v3491_v16 = vld [vmem:[%s4382_s0 + $0x120] sm:$0xff]  ;;  %v51_v21 = vld [vmem:[%s4382_s0 + $0x128] sm:$0xff] }
  0x21   :  { %v521_v60 = vsel %vm504_vm2, %v457_v57, inf  ;;  %v350_v61 = vunpack.c.0.s8 %v315_v58  ;;  %v351_v62 = vunpack.c.1.s8 %v315_v58  ;;  %vm286_vm11 = vnez %v237_v42  ;;  %v81_v42 = vld [vmem:[%s4383_s1 + $0x58] sm:$0xff] }
  0x22   :  { %v522_v2 = vmin.f32 %v456_v56, %v521_v60  ;;  %v314_v3 = vsel %vm286_vm11, 16843009, %v3231_v6  ;;  %v201_v0 = vunpack.c.0.s8 %v3442_v54  ;;  %vm88_vm12 = vnez %v74_v55 }
  0x23   :  { %vm406_vm13 = vcmp.ne.s32.totalorder %v350_v61, 0  ;;  %vm407_vm14 = vcmp.ne.s32.totalorder %v351_v62, 0  ;;  %v348_v7 = vunpack.c.0.s8 %v314_v3  ;;  %v349_v1 = vunpack.c.1.s8 %v314_v3 }
  0x24   :  { %523 = vmin.xlane.f32.xlu0 %v522_v2  ;;  %v462_v4 = vsel %vm406_vm13, %v3401_v26, %v112_v37  ;;  %v463_v5 = vsel %vm407_vm14, %v3406_v27, %v113_v40  ;;  %v256_v12 = vpack.c.b16 %v201_v0, %v200_v59  ;;  %vm89_vm15 = vnez %v75_v63  ;;  %v3504_v37 = vld [vmem:[%s4382_s0 + $0x110] sm:$0xff] }
  0x25   :  { %v533_v13 = vsel %vm504_vm2, %v463_v5, inf  ;;  %vm404_vm0 = vcmp.ne.s32.totalorder %v348_v7, 0  ;;  %vm405_vm1 = vcmp.ne.s32.totalorder %v349_v1, 0  ;;  %v130_v14 = vadd.f32 100000.0, %v3458_v9 }
  0x26   :  { %v534_v15 = vmin.f32 %v462_v4, %v533_v13  ;;  %v460_v17 = vsel %vm404_vm0, %v26_v44, %v110_v51  ;;  %v461_v10 = vsel %vm405_vm1, %v27_v45, %v111_v52  ;;  %v257_v18 = vpack.c.b8 %v256_v12, %v256_v12  ;;  %v80_v52 = vld [vmem:[%s4383_s1 + $0x50] sm:$0xff]  ;;  %v53_v4 = vld [vmem:[%s4382_s0 + $0x138] sm:$0xff] }
  0x27   :  { %v529_v20 = vsel %vm504_vm2, %v461_v10, inf  ;;  %v131_v22 = vadd.f32 100000.0, %v47_v8  ;;  %v3481_v23 = vsel %vm88_vm12, 16843009, %v3231_v6  ;;  %v3484_v24 = vsel %vm89_vm15, 16843009, %v3231_v6 }
  0x28   :  { %535 = vmin.xlane.f32.xlu1 %v534_v15  ;;  %v530_v25 = vmin.f32 %v460_v17, %v529_v20  ;;  %vm296_vm3 = vnez %v257_v18  ;;  %v184_v26 = vunpack.c.0.s8 %v3481_v23  ;;  %v185_v27 = vunpack.c.0.s8 %v3484_v24  ;;  %v3550_v20 = vld [vmem:[%s4382_s0 + $0x140] sm:$0xff] }
  0x29   :  { %v324_v28 = vsel %vm296_vm3, 16843009, %v3231_v6  ;;  %v114_v29 = vadd.f32 100000.0, %v3471_v11  ;;  %v115_v30 = vadd.f32 100000.0, %v3476_v19  ;;  %v204_v32 = vunpack.c.2.s8 %v3439_v53 }
  0x2a   :  { %531 = vmin.xlane.f32.xlu0 %v530_v25  ;;  %v368_v33 = vunpack.c.0.s8 %v324_v28  ;;  %v369_v34 = vunpack.c.1.s8 %v324_v28  ;;  %v240_v35 = vpack.c.b16 %v185_v27, %v184_v26  ;;  %v205_v36 = vunpack.c.2.s8 %v3442_v54  ;;  %v55_v25 = vld [vmem:[%s4382_s0 + $0x148] sm:$0xff] }
  0x2b   :  { %v134_v40 = vadd.f32 100000.0, %v3491_v16  ;;  %v135_v31 = vadd.f32 100000.0, %v51_v21  ;;  %v202_v43 = vunpack.c.1.s8 %v3439_v53  ;;  %v203_v44 = vunpack.c.1.s8 %v3442_v54 }
  0x2c   :  { %vm424_vm4 = vcmp.ne.s32.totalorder %v368_v33, 0  ;;  %vm425_vm5 = vcmp.ne.s32.totalorder %v369_v34, 0  ;;  %v241_v45 = vpack.c.b8 %v240_v35, %v240_v35  ;;  %v260_v38 = vpack.c.b16 %v205_v36, %v204_v32  ;;  %v57_v32 = vld [vmem:[%s4382_s0 + $0x158] sm:$0xff] }
  0x2d   :  { %v480_v46 = vsel %vm424_vm4, %v3458_v9, %v130_v14  ;;  %v481_v47 = vsel %vm425_vm5, %v47_v8, %v131_v22  ;;  %v132_v39 = vadd.f32 100000.0, %v3504_v37  ;;  %v258_v48 = vpack.c.b16 %v203_v44, %v202_v43  ;;  %v3574_v43 = vld [vmem:[%s4382_s0 + $0x160] sm:$0xff] }
  0x2e   :  { %v569_v49 = vsel %vm504_vm2, %v481_v47, inf  ;;  %vm288_vm6 = vnez %v241_v45  ;;  %v261_v50 = vpack.c.b8 %v260_v38, %v260_v38  ;;  %v133_v51 = vadd.f32 100000.0, %v3510_v41  ;;  %v3580_v38 = vld [vmem:[%s4382_s0 + $0x168] sm:$0xff] }
  0x2f   :  { %v570_v55 = vmin.f32 %v480_v46, %v569_v49  ;;  %v316_v56 = vsel %vm288_vm6, 16843009, %v3231_v6  ;;  %v259_v57 = vpack.c.b8 %v258_v48, %v258_v48  ;;  %v206_v58 = vunpack.c.3.s8 %v3439_v53 }
  0x30   :  { %v352_v59 = vunpack.c.0.s8 %v316_v56  ;;  %v353_v60 = vunpack.c.1.s8 %v316_v56  ;;  %vm298_vm7 = vnez %v261_v50  ;;  %v207_v61 = vunpack.c.3.s8 %v3442_v54  ;;  %v52_v54 = vld [vmem:[%s4382_s0 + $0x130] sm:$0xff] }
  0x31   :  { %571 = vmin.xlane.f32.xlu1 %v570_v55  ;;  %v326_v62 = vsel %vm298_vm7, 16843009, %v3231_v6  ;;  %vm297_vm8 = vnez %v259_v57  ;;  %vm94_vm9 = vnez %v80_v52  ;;  %vm95_vm10 = vnez %v81_v42  ;;  %v3589_v42 = vld [vmem:[%s4382_s0 + $0x170] sm:$0xff] }
  0x32   :  { %vm408_vm11 = vcmp.ne.s32.totalorder %v352_v59, 0  ;;  %vm409_vm12 = vcmp.ne.s32.totalorder %v353_v60, 0  ;;  %v372_v63 = vunpack.c.0.s8 %v326_v62  ;;  %v373_v2 = vunpack.c.1.s8 %v326_v62 }
  0x33   :  { %v464_v3 = vsel %vm408_vm11, %v3471_v11, %v114_v29  ;;  %v465_v9 = vsel %vm409_vm12, %v3476_v19, %v115_v30  ;;  %v325_v53 = vsel %vm297_vm8, 16843009, %v3231_v6  ;;  %v262_v0 = vpack.c.b16 %v207_v61, %v206_v58  ;;  %v3565_v30 = vld [vmem:[%s4382_s0 + $0x150] sm:$0xff]  ;;  %v82_v58 = vld [vmem:[%s4383_s1 + $0x60] sm:$0xff] }
  0x34   :  { %v537_v7 = vsel %vm504_vm2, %v465_v9, inf  ;;  %vm428_vm13 = vcmp.ne.s32.totalorder %v372_v63, 0  ;;  %vm429_vm14 = vcmp.ne.s32.totalorder %v373_v2, 0  ;;  %v370_v1 = vunpack.c.0.s8 %v325_v53 }
  0x35   :  { %v538_v5 = vmin.f32 %v464_v3, %v537_v7  ;;  %v484_v8 = vsel %vm428_vm13, %v3491_v16, %v134_v40  ;;  %v485_v12 = vsel %vm429_vm14, %v51_v21, %v135_v31  ;;  %v371_v13 = vunpack.c.1.s8 %v325_v53 }
  0x36   :  { %v577_v14 = vsel %vm504_vm2, %v485_v12, inf  ;;  %vm3540_vm15 = vcmp.ne.s32.totalorder %v370_v1, 0  ;;  %v136_v17 = vadd.f32 100000.0, %v52_v54  ;;  %v263_v10 = vpack.c.b8 %v262_v0, %v262_v0 }
  0x37   :  { %539 = vmin.xlane.f32.xlu0 %v538_v5  ;;  %v578_v18 = vmin.f32 %v484_v8, %v577_v14  ;;  %vm427_vm0 = vcmp.ne.s32.totalorder %v371_v13, 0  ;;  %v482_v11 = vsel %vm3540_vm15, %v3504_v37, %v132_v39  ;;  %v137_v19 = vadd.f32 100000.0, %v53_v4  ;;  %v83_v8 = vld [vmem:[%s4383_s1 + $0x68] sm:$0xff]  ;;  %v61_v14 = vld [vmem:[%s4382_s0 + $0x178] sm:$0xff] }
  0x38   :  { %v483_v22 = vsel %vm427_vm0, %v3510_v41, %v133_v51  ;;  %vm299_vm1 = vnez %v263_v10  ;;  %v164_v26 = vsel %vm94_vm9, 16843009, %v3231_v6  ;;  %v165_v27 = vsel %vm95_vm10, 16843009, %v3231_v6 }
  0x39   :  { %579 = vmin.xlane.f32.xlu1 %v578_v18  ;;  %v573_v16 = vsel %vm504_vm2, %v483_v22, inf  ;;  %v327_v21 = vsel %vm299_vm1, 16843009, %v3231_v6  ;;  %v208_v28 = vunpack.c.0.s8 %v164_v26  ;;  %v209_v29 = vunpack.c.0.s8 %v165_v27 }
  0x3a   :  { %v574_v33 = vmin.f32 %v482_v11, %v573_v16  ;;  %v374_v34 = vunpack.c.0.s8 %v327_v21  ;;  %v375_v35 = vunpack.c.1.s8 %v327_v21  ;;  %v138_v36 = vadd.f32 100000.0, %v3550_v20 }
  0x3b   :  { %v139_v37 = vadd.f32 100000.0, %v55_v25  ;;  %v264_v40 = vpack.c.b16 %v209_v29, %v208_v28  ;;  %v210_v31 = vunpack.c.1.s8 %v164_v26  ;;  %v211_v41 = vunpack.c.1.s8 %v165_v27 }
  0x3c   :  { %575 = vmin.xlane.f32.xlu0 %v574_v33  ;;  %vm430_vm3 = vcmp.ne.s32.totalorder %v374_v34, 0  ;;  %vm431_vm4 = vcmp.ne.s32.totalorder %v375_v35, 0  ;;  %v140_v44 = vadd.f32 100000.0, %v3565_v30  ;;  %v141_v45 = vadd.f32 100000.0, %v57_v32 }
  0x3d   :  { %v486_v46 = vsel %vm430_vm3, %v52_v54, %v136_v17  ;;  %v487_v47 = vsel %vm431_vm4, %v53_v4, %v137_v19  ;;  %v265_v39 = vpack.c.b8 %v264_v40, %v264_v40  ;;  %v266_v48 = vpack.c.b16 %v211_v41, %v210_v31  ;;  %v3648_v40 = vld [vmem:[%s4382_s0 + $0x90] sm:$0xff]  ;;  %v3653_v31 = vld [vmem:[%s4382_s0 + $0x98] sm:$0xff] }
  0x3e   :  { %v581_v49 = vsel %vm504_vm2, %v487_v47, inf  ;;  %v3584_v50 = vadd.f32 100000.0, %v3574_v43  ;;  %v212_v51 = vunpack.c.2.s8 %v164_v26  ;;  %v213_v52 = vunpack.c.2.s8 %v165_v27 }
  0x3f   :  { %v582_v55 = vmin.f32 %v486_v46, %v581_v49  ;;  %vm300_vm5 = vnez %v265_v39  ;;  %v267_v56 = vpack.c.b8 %v266_v48, %v266_v48  ;;  %v143_v57 = vadd.f32 100000.0, %v3580_v38  ;;  %v3671_v49 = vld [vmem:[%s4382_s0 + $0x198] sm:$0xff] }
  0x40   :  { %v328_v59 = vsel %vm300_vm5, 16843009, %v3231_v6  ;;  %v268_v60 = vpack.c.b16 %v213_v52, %v212_v51  ;;  %v214_v61 = vunpack.c.3.s8 %v164_v26  ;;  %v215_v62 = vunpack.c.3.s8 %v165_v27 }
  0x41   :  { %583 = vmin.xlane.f32.xlu0 %v582_v55  ;;  %v376_v63 = vunpack.c.0.s8 %v328_v59  ;;  %v377_v2 = vunpack.c.1.s8 %v328_v59  ;;  %vm301_vm6 = vnez %v267_v56  ;;  %v144_v3 = vadd.f32 100000.0, %v3589_v42  ;;  %v3678_v55 = vld [vmem:[%s4382_s0 + $0xa0] sm:$0xff]  ;;  %v3683_v56 = vld [vmem:[%s4382_s0 + $0xa8] sm:$0xff] }
  0x42   :  { %v329_v9 = vsel %vm301_vm6, 16843009, %v3231_v6  ;;  %v269_v53 = vpack.c.b8 %v268_v60, %v268_v60  ;;  %v270_v54 = vpack.c.b16 %v215_v62, %v214_v61  ;;  %vm96_vm7 = vnez %v82_v58 }
  0x43   :  { %vm432_vm8 = vcmp.ne.s32.totalorder %v376_v63, 0  ;;  %vm433_vm9 = vcmp.ne.s32.totalorder %v377_v2, 0  ;;  %v378_v0 = vunpack.c.0.s8 %v329_v9  ;;  %v379_v7 = vunpack.c.1.s8 %v329_v9 }
  0x44   :  { %v488_v1 = vsel %vm432_vm8, %v3550_v20, %v138_v36  ;;  %v489_v4 = vsel %vm433_vm9, %v55_v25, %v139_v37  ;;  %vm302_vm10 = vnez %v269_v53  ;;  %v271_v5 = vpack.c.b8 %v270_v54, %v270_v54  ;;  %v3612_v20 = vld [vmem:[%s4382_s0 + $0x180] sm:$0xff] }
  0x45   :  { %v585_v12 = vsel %vm504_vm2, %v489_v4, inf  ;;  %vm434_vm11 = vcmp.ne.s32.totalorder %v378_v0, 0  ;;  %vm435_vm12 = vcmp.ne.s32.totalorder %v379_v7, 0  ;;  %v330_v13 = vsel %vm302_vm10, 16843009, %v3231_v6 }
  0x46   :  { %v586_v15 = vmin.f32 %v488_v1, %v585_v12  ;;  %v490_v17 = vsel %vm434_vm11, %v3565_v30, %v140_v44  ;;  %v491_v10 = vsel %vm435_vm12, %v57_v32, %v141_v45  ;;  %v380_v18 = vunpack.c.0.s8 %v330_v13  ;;  %v3627_v30 = vld [vmem:[%s4382_s0 + $0x188] sm:$0xff] }
  0x47   :  { %v589_v11 = vsel %vm504_vm2, %v491_v10, inf  ;;  %v381_v19 = vunpack.c.1.s8 %v330_v13  ;;  %vm303_vm13 = vnez %v271_v5  ;;  %vm97_vm14 = vnez %v83_v8 }
  0x48   :  { %587 = vmin.xlane.f32.xlu1 %v586_v15  ;;  %v590_v22 = vmin.f32 %v490_v17, %v589_v11  ;;  %vm3614_vm15 = vcmp.ne.s32.totalorder %v380_v18, 0  ;;  %v145_v26 = vadd.f32 100000.0, %v61_v14  ;;  %v331_v27 = vsel %vm303_vm13, 16843009, %v3231_v6 }
  0x49   :  { %vm437_vm0 = vcmp.ne.s32.totalorder %v381_v19, 0  ;;  %v492_v16 = vsel %vm3614_vm15, %v3574_v43, %v3584_v50  ;;  %v382_v21 = vunpack.c.0.s8 %v331_v27  ;;  %v383_v28 = vunpack.c.1.s8 %v331_v27 }
  0x4a   :  { %v493_v29 = vsel %vm437_vm0, %v3580_v38, %v143_v57  ;;  %v3630_v32 = vadd.f32 100000.0, %v3612_v20  ;;  %v3634_v33 = vsel %vm96_vm7, 16843009, %v3231_v6  ;;  %v3637_v34 = vsel %vm97_vm14, 16843009, %v3231_v6  ;;  %v3662_v38 = vld [vmem:[%s4382_s0 + $0x190] sm:$0xff] }
  0x4b   :  { %v593_v35 = vsel %vm504_vm2, %v493_v29, inf  ;;  %vm3640_vm1 = vcmp.ne.s32.totalorder %v382_v21, 0  ;;  %vm439_vm3 = vcmp.ne.s32.totalorder %v383_v28, 0  ;;  %v216_v37 = vunpack.c.0.s8 %v3634_v33  ;;  %v67_v28 = vld [vmem:[%s4382_s0 + $0x1a8] sm:$0xff] }
  0x4c   :  { %591 = vmin.xlane.f32.xlu1 %v590_v22  ;;  %v594_v41 = vmin.f32 %v492_v16, %v593_v35  ;;  %v494_v43 = vsel %vm3640_vm1, %v3589_v42, %v144_v3  ;;  %v495_v44 = vsel %vm439_vm3, %v61_v14, %v145_v26  ;;  %v217_v45 = vunpack.c.0.s8 %v3637_v34  ;;  %v3696_v3 = vld [vmem:[%s4382_s0 + $0x1a0] sm:$0xff] }
  0x4d   :  { %v597_v46 = vsel %vm504_vm2, %v495_v44, inf  ;;  %v147_v47 = vadd.f32 100000.0, %v3627_v30  ;;  %v186_v39 = vunpack.c.1.s8 %v3481_v23  ;;  %v187_v48 = vunpack.c.1.s8 %v3484_v24 }
  0x4e   :  { %v598_v50 = vmin.f32 %v494_v43, %v597_v46  ;;  %v272_v51 = vpack.c.b16 %v217_v45, %v216_v37  ;;  %v116_v52 = vadd.f32 100000.0, %v3648_v40  ;;  %v117_v42 = vadd.f32 100000.0, %v3653_v31 }
  0x4f   :  { %v242_v57 = vpack.c.b16 %v187_v48, %v186_v39  ;;  %v3686_v58 = vadd.f32 100000.0, %v3662_v38  ;;  %v218_v59 = vunpack.c.1.s8 %v3634_v33  ;;  %v219_v60 = vunpack.c.1.s8 %v3637_v34 }
  0x50   :  { %595 = vmin.xlane.f32.xlu1 %v594_v41  ;;  %v273_v61 = vpack.c.b8 %v272_v51, %v272_v51  ;;  %v149_v62 = vadd.f32 100000.0, %v3671_v49  ;;  %v188_v63 = vunpack.c.2.s8 %v3481_v23  ;;  %v189_v2 = vunpack.c.2.s8 %v3484_v24 }
  0x51   :  { %v243_v9 = vpack.c.b8 %v242_v57, %v242_v57  ;;  %v274_v53 = vpack.c.b16 %v219_v60, %v218_v59  ;;  %v118_v54 = vadd.f32 100000.0, %v3678_v55  ;;  %v119_v0 = vadd.f32 100000.0, %v3683_v56 }
  0x52   :  { %vm304_vm4 = vnez %v273_v61  ;;  %v244_v7 = vpack.c.b16 %v189_v2, %v188_v63  ;;  %v220_v1 = vunpack.c.2.s8 %v3634_v33  ;;  %v221_v4 = vunpack.c.2.s8 %v3637_v34  ;;  %v68_v63 = vld [vmem:[%s4382_s0 + $0x1b0] sm:$0xff] }
  0x53   :  { %v332_v5 = vsel %vm304_vm4, 16843009, %v3231_v6  ;;  %vm289_vm5 = vnez %v243_v9  ;;  %v275_v8 = vpack.c.b8 %v274_v53, %v274_v53  ;;  %v3704_v12 = vadd.f32 100000.0, %v3696_v3 }
  0x54   :  { %599 = vmin.xlane.f32.xlu1 %v598_v50  ;;  %v384_v13 = vunpack.c.0.s8 %v332_v5  ;;  %v385_v14 = vunpack.c.1.s8 %v332_v5  ;;  %v317_v15 = vsel %vm289_vm5, 16843009, %v3231_v6  ;;  %v245_v17 = vpack.c.b8 %v244_v7, %v244_v7 }
  0x55   :  { %v354_v10 = vunpack.c.0.s8 %v317_v15  ;;  %v355_v18 = vunpack.c.1.s8 %v317_v15  ;;  %vm305_vm6 = vnez %v275_v8  ;;  %v276_v11 = vpack.c.b16 %v221_v4, %v220_v1 }
  0x56   :  { %vm440_vm7 = vcmp.ne.s32.totalorder %v384_v13, 0  ;;  %vm441_vm8 = vcmp.ne.s32.totalorder %v385_v14, 0  ;;  %v333_v19 = vsel %vm305_vm6, 16843009, %v3231_v6  ;;  %vm290_vm9 = vnez %v245_v17  ;;  %v38_v17 = vld [vmem:[%s4382_s0 + $0xc0] sm:$0xff] }
  0x57   :  { %v496_v22 = vsel %vm440_vm7, %v3612_v20, %v3630_v32  ;;  %v497_v25 = vsel %vm441_vm8, %v3627_v30, %v147_v47  ;;  %vm410_vm10 = vcmp.ne.s32.totalorder %v354_v10, 0  ;;  %vm411_vm11 = vcmp.ne.s32.totalorder %v355_v18, 0  ;;  %v41_v32 = vld [vmem:[%s4382_s0 + $0xd8] sm:$0xff] }
  0x58   :  { %v601_v26 = vsel %vm504_vm2, %v497_v25, inf  ;;  %v466_v27 = vsel %vm410_vm10, %v3648_v40, %v116_v52  ;;  %v467_v16 = vsel %vm411_vm11, %v3653_v31, %v117_v42  ;;  %v386_v21 = vunpack.c.0.s8 %v333_v19 }
  0x59   :  { %v602_v29 = vmin.f32 %v496_v22, %v601_v26  ;;  %v541_v35 = vsel %vm504_vm2, %v467_v16, inf  ;;  %v387_v36 = vunpack.c.1.s8 %v333_v19  ;;  %v318_v20 = vsel %vm290_vm9, 16843009, %v3231_v6 }
  0x5a   :  { %v542_v30 = vmin.f32 %v466_v27, %v541_v35  ;;  %vm3719_vm12 = vcmp.ne.s32.totalorder %v386_v21, 0  ;;  %v356_v37 = vunpack.c.0.s8 %v318_v20  ;;  %v357_v40 = vunpack.c.1.s8 %v318_v20  ;;  %v39_v27 = vld [vmem:[%s4382_s0 + $0xc8] sm:$0xff] }
  0x5b   :  { %603 = vmin.xlane.f32.xlu1 %v602_v29  ;;  %vm443_vm13 = vcmp.ne.s32.totalorder %v387_v36, 0  ;;  %v498_v31 = vsel %vm3719_vm12, %v3662_v38, %v3686_v58  ;;  %v151_v41 = vadd.f32 100000.0, %v67_v28  ;;  %v277_v43 = vpack.c.b8 %v276_v11, %v276_v11 }
  0x5c   :  { %543 = vmin.xlane.f32.xlu0 %v542_v30  ;;  %v499_v44 = vsel %vm443_vm13, %v3671_v49, %v149_v62  ;;  %vm412_vm14 = vcmp.ne.s32.totalorder %v356_v37, 0  ;;  %vm413_vm15 = vcmp.ne.s32.totalorder %v357_v40, 0  ;;  %v190_v45 = vunpack.c.3.s8 %v3481_v23  ;;  %v76_v49 = vld [vmem:[%s4383_s1 + $0x30] sm:$0xff]  ;;  %v77_v23 = vld [vmem:[%s4383_s1 + $0x38] sm:$0xff] }
  0x5d   :  { %v605_v46 = vsel %vm504_vm2, %v499_v44, inf  ;;  %v468_v47 = vsel %vm412_vm14, %v3678_v55, %v118_v54  ;;  %v469_v39 = vsel %vm413_vm15, %v3683_v56, %v119_v0  ;;  %vm306_vm0 = vnez %v277_v43  ;;  %v36_v56 = vld [vmem:[%s4382_s0 + $0xb0] sm:$0xff] }
  0x5e   :  { %v606_v48 = vmin.f32 %v498_v31, %v605_v46  ;;  %v545_v50 = vsel %vm504_vm2, %v469_v39, inf  ;;  %v334_v38 = vsel %vm306_vm0, 16843009, %v3231_v6  ;;  %v191_v51 = vunpack.c.3.s8 %v3484_v24  ;;  %v37_v24 = vld [vmem:[%s4382_s0 + $0xb8] sm:$0xff]  ;;  %v40_v30 = vld [vmem:[%s4382_s0 + $0xd0] sm:$0xff] }
  0x5f   :  { %v546_v52 = vmin.f32 %v468_v47, %v545_v50  ;;  %v388_v42 = vunpack.c.0.s8 %v334_v38  ;;  %v389_v55 = vunpack.c.1.s8 %v334_v38  ;;  %v222_v58 = vunpack.c.3.s8 %v3634_v33 }
  0x60   :  { %607 = vmin.xlane.f32.xlu1 %v606_v48  ;;  %v246_v57 = vpack.c.b16 %v191_v51, %v190_v45  ;;  %v223_v59 = vunpack.c.3.s8 %v3637_v34  ;;  %vm90_vm4 = vnez %v76_v49  ;;  %vm91_vm5 = vnez %v77_v23  ;;  %v69_v34 = vld [vmem:[%s4382_s0 + $0x1b8] sm:$0xff] }
  0x61   :  { %547 = vmin.xlane.f32.xlu0 %v546_v52  ;;  %vm444_vm1 = vcmp.ne.s32.totalorder %v388_v42, 0  ;;  %vm445_vm3 = vcmp.ne.s32.totalorder %v389_v55, 0  ;;  %v120_v33 = vadd.f32 100000.0, %v36_v56  ;;  %v121_v53 = vadd.f32 100000.0, %v37_v24 }
  0x62   :  { %v500_v60 = vsel %vm444_vm1, %v3696_v3, %v3704_v12  ;;  %v501_v61 = vsel %vm445_vm3, %v67_v28, %v151_v41  ;;  %v247_v62 = vpack.c.b8 %v246_v57, %v246_v57  ;;  %v278_v2 = vpack.c.b16 %v223_v59, %v222_v58  ;;  %v42_v59 = vld [vmem:[%s4382_s0 + $0xe0] sm:$0xff] }
  0x63   :  { %v609_v9 = vsel %vm504_vm2, %v501_v61, inf  ;;  %v3759_v54 = vsel %vm90_vm4, 16843009, %v3231_v6  ;;  %v3762_v7 = vsel %vm91_vm5, 16843009, %v3231_v6  ;;  %v152_v4 = vadd.f32 100000.0, %v68_v63 }
  0x64   :  { %v610_v0 = vmin.f32 %v500_v60, %v609_v9  ;;  %vm291_vm6 = vnez %v247_v62  ;;  %v279_v3 = vpack.c.b8 %v278_v2, %v278_v2  ;;  %v192_v5 = vunpack.c.0.s8 %v3759_v54  ;;  %v43_v60 = vld [vmem:[%s4382_s0 + $0xe8] sm:$0xff]  ;;  %v44_v9 = vld [vmem:[%s4382_s0 + $0xf0] sm:$0xff] }
  0x65   :  { %v319_v1 = vsel %vm291_vm6, 16843009, %v3231_v6  ;;  %v193_v8 = vunpack.c.0.s8 %v3762_v7  ;;  %v153_v14 = vadd.f32 100000.0, %v69_v34  ;;  %v194_v18 = vunpack.c.1.s8 %v3759_v54 }
  0x66   :  { %611 = vmin.xlane.f32.xlu1 %v610_v0  ;;  %v358_v12 = vunpack.c.0.s8 %v319_v1  ;;  %v359_v13 = vunpack.c.1.s8 %v319_v1  ;;  %vm307_vm7 = vnez %v279_v3  ;;  %v195_v11 = vunpack.c.1.s8 %v3762_v7 }
  0x67   :  { %v335_v15 = vsel %vm307_vm7, 16843009, %v3231_v6  ;;  %v248_v10 = vpack.c.b16 %v193_v8, %v192_v5  ;;  %v122_v29 = vadd.f32 100000.0, %v38_v17  ;;  %v123_v40 = vadd.f32 100000.0, %v39_v27 }
  0x68   :  { %vm414_vm8 = vcmp.ne.s32.totalorder %v358_v12, 0  ;;  %vm415_vm9 = vcmp.ne.s32.totalorder %v359_v13, 0  ;;  %v390_v19 = vunpack.c.0.s8 %v335_v15  ;;  %v391_v22 = vunpack.c.1.s8 %v335_v15 }
  0x69   :  { %v470_v25 = vsel %vm414_vm8, %v36_v56, %v120_v33  ;;  %v471_v26 = vsel %vm415_vm9, %v37_v24, %v121_v53  ;;  %v249_v16 = vpack.c.b8 %v248_v10, %v248_v10  ;;  %v250_v21 = vpack.c.b16 %v195_v11, %v194_v18  ;;  %v45_v33 = vld [vmem:[%s4382_s0 + $0xf8] sm:$0xff]  ;;  %s3233_s0 = smov [#allocation2]  }
  0x6a   :  { %v549_v28 = vsel %vm504_vm2, %v471_v26, inf  ;;  %vm446_vm10 = vcmp.ne.s32.totalorder %v390_v19, 0  ;;  %vm447_vm11 = vcmp.ne.s32.totalorder %v391_v22, 0  ;;  %v196_v46 = vunpack.c.2.s8 %v3759_v54  ;;  %s3194_s8 = sshll.u32 %s3233_s0, 4  ;;  %s3195_s8 = int_to_ptr.vmem [resolvable:$true] %s3194_s8 }
  0x6b   :  { %v550_v35 = vmin.f32 %v470_v25, %v549_v28  ;;  %v502_v36 = vsel %vm446_vm10, %v68_v63, %v152_v4  ;;  %v503_v20 = vsel %vm447_vm11, %v69_v34, %v153_v14  ;;  %vm292_vm12 = vnez %v249_v16  ;;  %s3207_s9 = scalar_lea.vmem %s3195_s8, 32  ;;  %p3212_p1 = scmp.lt.s32.totalorder %s3195_s8, %s3195_s8 }
  0x6c   :  { %v613_v37 = vsel %vm504_vm2, %v503_v20, inf  ;;  %v320_v31 = vsel %vm292_vm12, 16843009, %v3231_v6  ;;  %v251_v41 = vpack.c.b8 %v250_v21, %v250_v21  ;;  %v124_v47 = vadd.f32 100000.0, %v40_v30  ;;  %p3208_p0 = scmp.ne.s32.totalorder %s3195_s8, %s3207_s9  ;;  %p3213_p2 = scmp.lt.s32.totalorder %s3207_s9, %s3207_s9 }
  0x6d   :  { %551 = vmin.xlane.f32.xlu0 %v550_v35  ;;  %v614_v43 = vmin.f32 %v502_v36, %v613_v37  ;;  %v360_v44 = vunpack.c.0.s8 %v320_v31  ;;  %v361_v45 = vunpack.c.1.s8 %v320_v31  ;;  %v125_v39 = vadd.f32 100000.0, %v41_v32 }
  0x6e   :  { %vm293_vm13 = vnez %v251_v41  ;;  %v197_v48 = vunpack.c.2.s8 %v3762_v7  ;;  %v198_v38 = vunpack.c.3.s8 %v3759_v54  ;;  %v199_v56 = vunpack.c.3.s8 %v3762_v7  ;;  %p3214_p3 = por %p3213_p2, %p3212_p1 }
  0x6f   :  { %615 = vmin.xlane.f32.xlu1 %v614_v43  ;;  %vm416_vm14 = vcmp.ne.s32.totalorder %v360_v44, 0  ;;  %vm417_vm15 = vcmp.ne.s32.totalorder %v361_v45, 0  ;;  %v321_v50 = vsel %vm293_vm13, 16843009, %v3231_v6  ;;  %v126_v34 = vadd.f32 100000.0, %v42_v59 }
  0x70   :  { %v472_v51 = vsel %vm416_vm14, %v38_v17, %v122_v29  ;;  %v473_v49 = vsel %vm417_vm15, %v39_v27, %v123_v40  ;;  %v362_v23 = vunpack.c.0.s8 %v321_v50  ;;  %v363_v52 = vunpack.c.1.s8 %v321_v50  ;;  %p3215_p4 = pnand %p3214_p3, %p3208_p0 }
  0x71   :  { %v553_v42 = vsel %vm504_vm2, %v473_v49, inf  ;;  %v252_v55 = vpack.c.b16 %v197_v48, %v196_v46  ;;  %v254_v62 = vpack.c.b16 %v199_v56, %v198_v38  ;;  %v127_v54 = vadd.f32 100000.0, %v43_v60 }
  0x72   :  { %v554_v24 = vmin.f32 %v472_v51, %v553_v42  ;;  %vm418_vm0 = vcmp.ne.s32.totalorder %v362_v23, 0  ;;  %vm419_vm1 = vcmp.ne.s32.totalorder %v363_v52, 0  ;;  %v128_v1 = vadd.f32 100000.0, %v44_v9 }
  0x73   :  { %v474_v57 = vsel %vm418_vm0, %v40_v30, %v124_v47  ;;  %v475_v58 = vsel %vm419_vm1, %v41_v32, %v125_v39  ;;  %v253_v61 = vpack.c.b8 %v252_v55, %v252_v55  ;;  %v255_v53 = vpack.c.b8 %v254_v62, %v254_v62 }
  0x74   :  { %555 = vmin.xlane.f32.xlu0 %v554_v24  ;;  %v557_v63 = vsel %vm504_vm2, %v475_v58, inf  ;;  %v129_v4 = vadd.f32 100000.0, %v45_v33  ;;  %v645_v22 = vlaneseq  ;;  %vm3015_vm9 = vcmask 195712  }
  0x75   :  { %v558_v2 = vmin.f32 %v474_v57, %v557_v63  ;;  %vm294_vm3 = vnez %v253_v61  ;;  %vm295_vm4 = vnez %v255_v53  ;;  %vm3022_vm10 = vcmask 261312  }
  0x76   :  { %v322_v0 = vsel %vm294_vm3, 16843009, %v3231_v6  ;;  %v323_v5 = vsel %vm295_vm4, 16843009, %v3231_v6  ;;  %v3232_v6 = vmov 1966171168  }
  0x77   :  { %v364_v3 = vunpack.c.0.s8 %v322_v0  ;;  %v365_v7 = vunpack.c.1.s8 %v322_v0  ;;  %v366_v8 = vunpack.c.0.s8 %v323_v5  ;;  %v367_v12 = vunpack.c.1.s8 %v323_v5 }
  0x78   :  { %559 = vmin.xlane.f32.xlu0 %v558_v2  ;;  %v1546_v25 = vunpack.c.l.s4 %v3232_v6  ;;  %v3809_v26 = vshrl.u32 %v645_v22, 7  ;;  %vm3029_vm11 = vcmask 326912   ;;  %vm3036_vm12 = vcmask 392512  }
  0x79   :  { %vm420_vm5 = vcmp.ne.s32.totalorder %v364_v3, 0  ;;  %vm421_vm6 = vcmp.ne.s32.totalorder %v365_v7, 0  ;;  %vm422_vm7 = vcmp.ne.s32.totalorder %v366_v8, 0  ;;  %vm423_vm8 = vcmp.ne.s32.totalorder %v367_v12, 0 }
  0x7a   :  { %v476_v13 = vsel %vm420_vm5, %v42_v59, %v126_v34  ;;  %v477_v14 = vsel %vm421_vm6, %v43_v60, %v127_v54  ;;  %v478_v10 = vsel %vm422_vm7, %v44_v9, %v128_v1  ;;  %v479_v18 = vsel %vm423_vm8, %v45_v33, %v129_v4 }
  0x7b   :  { %v561_v15 = vsel %vm504_vm2, %v477_v14, inf  ;;  %v565_v11 = vsel %vm504_vm2, %v479_v18, inf  ;;  %v1547_v27 = vunpack.c.0.s8 %v1546_v25  ;;  %v3812_v16 = vsub.s32 0, %v3809_v26 }
  0x7c   :  { %v562_v17 = vmin.f32 %v476_v13, %v561_v15  ;;  %v566_v19 = vmin.f32 %v478_v10, %v565_v11  ;;  %v3815_v21 = vsub.s32 1, %v3809_v26  ;;  %v3818_v28 = vsub.s32 2, %v3809_v26 }
  0x7d   :  { %v3821_v29 = vsub.s32 3, %v3809_v26  ;;  %v3824_v35 = vsub.s32 4, %v3809_v26  ;;  %v3827_v36 = vsub.s32 5, %v3809_v26  ;;  %v3830_v20 = vsub.s32 6, %v3809_v26 }
  0x7e   :  { %563 = vmin.xlane.f32.xlu0 %v562_v17  ;;  %v3833_v30 = vsub.s32 7, %v3809_v26  ;;  %v3836_v37 = vsub.s32 %v1547_v27, %v3809_v26  ;;  %vm3008_vm2 = vcmask 130112   ;;  %vm3043_vm13 = vcmask 458112  }
  0x7f   :  { %vm3050_vm14 = vcmask 523712   ;;  %vm3057_vm15 = vcmask 589312   ;;  %vm3064_vm0 = vcmask 654912   ;;  %vm3071_vm1 = vcmask 720512  }
  0x80   :  { %vm3078_vm3 = vcmask 786112   ;;  %vm3085_vm4 = vcmask 851712   ;;  %vm3092_vm5 = vcmask 917312   ;;  %vm3099_vm6 = vcmask 982912  }
  0x81   :  { %vm3106_vm7 = vcmask 1048512   ;;  %vm3185_vm8 = vcmp.lt.s32.totalorder %v645_v22, 224 }
  0x82   :  { %567 = vmin.xlane.f32.xlu0 %v566_v19 }
  0xa1   :  { %v508_v32 = vpop.xlane.xlu0 %507  ;;  %v516_v44 = vpop.xlane.xlu1 %515 }
  0xa2   :  { %v648_v40 = vrot.slane %v508_v32, %v3812_v16  ;;  %v652_v31 = vrot.slane %v508_v32, %v3815_v21  ;;  %v656_v41 = vrot.slane %v508_v32, %v3818_v28  ;;  %v660_v43 = vrot.slane %v508_v32, %v3821_v29 }
  0xa3   :  { %v664_v45 = vrot.slane %v508_v32, %v3824_v35  ;;  %v668_v46 = vrot.slane %v508_v32, %v3827_v36  ;;  %v672_v47 = vrot.slane %v508_v32, %v3830_v20  ;;  %v676_v39 = vrot.slane %v508_v32, %v3833_v30 }
  0xa4   :  { %v1541_v48 = vcombine.low %v648_v40, %v652_v31  ;;  %v1542_v50 = vcombine.low %v656_v41, %v660_v43  ;;  %v712_v38 = vrot.slane %v516_v44, %v3812_v16  ;;  %v716_v51 = vrot.slane %v516_v44, %v3815_v21 }
  0xa5   :  { %v1543_v49 = vcombine.low %v664_v45, %v668_v46  ;;  %v1544_v23 = vcombine.low %v672_v47, %v676_v39  ;;  %v720_v52 = vrot.slane %v516_v44, %v3818_v28  ;;  %v724_v42 = vrot.slane %v516_v44, %v3821_v29  ;;  %v520_v25 = vpop.xlane.xlu1 %519 }
  0xa6   :  { %v1551_v55 = vrot.slane %v1541_v48, %v3836_v37  ;;  %v1558_v56 = vrot.slane %v1542_v50, %v3836_v37  ;;  %v728_v24 = vrot.slane %v516_v44, %v3824_v35  ;;  %v732_v57 = vrot.slane %v516_v44, %v3827_v36 }
  0xa7   :  { %v512_v58 = vpop.xlane.xlu0 %511  ;;  %v1565_v59 = vrot.slane %v1543_v49, %v3836_v37  ;;  %v1572_v60 = vrot.slane %v1544_v23, %v3836_v37  ;;  %v736_v61 = vrot.slane %v516_v44, %v3830_v20  ;;  %v740_v62 = vrot.slane %v516_v44, %v3833_v30 }
  0xa8   :  { %v1573_v63 = vcombine.low %v1551_v55, %v1558_v56  ;;  %v680_v2 = vrot.slane %v512_v58, %v3812_v16  ;;  %v684_v9 = vrot.slane %v512_v58, %v3815_v21  ;;  %v688_v33 = vrot.slane %v512_v58, %v3818_v28 }
  0xa9   :  { %v1574_v53 = vcombine.low %v1565_v59, %v1572_v60  ;;  %v692_v34 = vrot.slane %v512_v58, %v3821_v29  ;;  %v696_v54 = vrot.slane %v512_v58, %v3824_v35  ;;  %v700_v0 = vrot.slane %v512_v58, %v3827_v36 }
  0xaa   :  { %v1581_v3 = vrot.slane %v1573_v63, %v3836_v37  ;;  %v704_v7 = vrot.slane %v512_v58, %v3830_v20  ;;  %v708_v1 = vrot.slane %v512_v58, %v3833_v30  ;;  %v1590_v4 = vcombine.low %v680_v2, %v684_v9 }
  0xab   :  { %v1588_v5 = vrot.slane %v1574_v53, %v3836_v37  ;;  %v1591_v8 = vcombine.low %v688_v33, %v692_v34  ;;  %v1592_v12 = vcombine.low %v696_v54, %v700_v0  ;;  %v1639_v13 = vcombine.low %v712_v38, %v716_v51  ;;  %v528_v60 = vpop.xlane.xlu1 %527 }
  0xac   :  { %v1593_v14 = vcombine.low %v704_v7, %v708_v1  ;;  %v1600_v15 = vrot.slane %v1590_v4, %v3836_v37  ;;  %v1640_v17 = vcombine.low %v720_v52, %v724_v42  ;;  %v1641_v10 = vcombine.low %v728_v24, %v732_v57 }
  0xad   :  { %v1589_v18 = vcombine.low %v1581_v3, %v1588_v5  ;;  %v1607_v11 = vrot.slane %v1591_v8, %v3836_v37  ;;  %v1614_v19 = vrot.slane %v1592_v12, %v3836_v37  ;;  %v1642_v6 = vcombine.low %v736_v61, %v740_v62 }
  0xae   :  { %v1621_v27 = vrot.slane %v1593_v14, %v3836_v37  ;;  %v1649_v32 = vrot.slane %v1639_v13, %v3836_v37  ;;  %v1656_v40 = vrot.slane %v1640_v17, %v3836_v37  ;;  %v1663_v31 = vrot.slane %v1641_v10, %v3836_v37 }
  0xaf   :  { %2914 = vperm.xlu0 %3205, %v1589_v18   ;;  %v1622_v41 = vcombine.low %v1600_v15, %v1607_v11  ;;  %v1670_v43 = vrot.slane %v1642_v6, %v3836_v37  ;;  %v744_v44 = vrot.slane %v520_v25, %v3812_v16  ;;  %v748_v45 = vrot.slane %v520_v25, %v3815_v21 }
  0xb0   :  { %v1623_v46 = vcombine.low %v1614_v19, %v1621_v27  ;;  %v1671_v47 = vcombine.low %v1649_v32, %v1656_v40  ;;  %v752_v39 = vrot.slane %v520_v25, %v3818_v28  ;;  %v756_v48 = vrot.slane %v520_v25, %v3821_v29 }
  0xb1   :  { %v1630_v50 = vrot.slane %v1622_v41, %v3836_v37  ;;  %v1672_v38 = vcombine.low %v1663_v31, %v1670_v43  ;;  %v760_v51 = vrot.slane %v520_v25, %v3824_v35  ;;  %v764_v49 = vrot.slane %v520_v25, %v3827_v36  ;;  %v524_v56 = vpop.xlane.xlu0 %523 }
  0xb2   :  { %v1637_v23 = vrot.slane %v1623_v46, %v3836_v37  ;;  %v1679_v52 = vrot.slane %v1671_v47, %v3836_v37  ;;  %v768_v42 = vrot.slane %v520_v25, %v3830_v20  ;;  %v772_v55 = vrot.slane %v520_v25, %v3833_v30 }
  0xb3   :  { %v1686_v24 = vrot.slane %v1672_v38, %v3836_v37  ;;  %v1688_v57 = vcombine.low %v744_v44, %v748_v45  ;;  %v1689_v58 = vcombine.low %v752_v39, %v756_v48  ;;  %v1690_v59 = vcombine.low %v760_v51, %v764_v49 }
  0xb4   :  { %v1638_v61 = vcombine.low %v1630_v50, %v1637_v23  ;;  %v1691_v62 = vcombine.low %v768_v42, %v772_v55  ;;  %v776_v63 = vrot.slane %v524_v56, %v3812_v16  ;;  %v780_v2 = vrot.slane %v524_v56, %v3815_v21 }
  0xb5   :  { %v1687_v9 = vcombine.low %v1679_v52, %v1686_v24  ;;  %v1698_v33 = vrot.slane %v1688_v57, %v3836_v37  ;;  %v1705_v53 = vrot.slane %v1689_v58, %v3836_v37  ;;  %v1712_v34 = vrot.slane %v1690_v59, %v3836_v37  ;;  %v3903_v19 = vpop.xlane.xlu1 %535 }
  0xb6   :  { %2917 = vperm.xlu1 %3206, %v1638_v61   ;;  %v1719_v54 = vrot.slane %v1691_v62, %v3836_v37  ;;  %v784_v0 = vrot.slane %v524_v56, %v3818_v28  ;;  %v788_v3 = vrot.slane %v524_v56, %v3821_v29  ;;  %v792_v7 = vrot.slane %v524_v56, %v3824_v35 }
  0xb7   :  { %v1720_v1 = vcombine.low %v1698_v33, %v1705_v53  ;;  %v796_v4 = vrot.slane %v524_v56, %v3827_v36  ;;  %v800_v5 = vrot.slane %v524_v56, %v3830_v20  ;;  %v804_v8 = vrot.slane %v524_v56, %v3833_v30  ;;  %v532_v39 = vpop.xlane.xlu0 %531 }
  0xb8   :  { %v1721_v12 = vcombine.low %v1712_v34, %v1719_v54  ;;  %v1737_v13 = vcombine.low %v776_v63, %v780_v2  ;;  %v1738_v14 = vcombine.low %v784_v0, %v788_v3  ;;  %v808_v15 = vrot.slane %v528_v60, %v3812_v16 }
  0xb9   :  { %v1728_v17 = vrot.slane %v1720_v1, %v3836_v37  ;;  %v1739_v10 = vcombine.low %v792_v7, %v796_v4  ;;  %v1740_v18 = vcombine.low %v800_v5, %v804_v8  ;;  %v812_v11 = vrot.slane %v528_v60, %v3815_v21 }
  0xba   :  { %2920 = vperm.xlu1 %3206, %v1687_v9   ;;  %v1735_v6 = vrot.slane %v1721_v12, %v3836_v37  ;;  %v1747_v25 = vrot.slane %v1737_v13, %v3836_v37  ;;  %v1754_v27 = vrot.slane %v1738_v14, %v3836_v37  ;;  %v816_v32 = vrot.slane %v528_v60, %v3818_v28 }
  0xbb   :  { %v1761_v40 = vrot.slane %v1739_v10, %v3836_v37  ;;  %v1768_v31 = vrot.slane %v1740_v18, %v3836_v37  ;;  %v820_v41 = vrot.slane %v528_v60, %v3821_v29  ;;  %v824_v43 = vrot.slane %v528_v60, %v3824_v35 }
  0xbc   :  { %v1736_v44 = vcombine.low %v1728_v17, %v1735_v6  ;;  %v1769_v45 = vcombine.low %v1747_v25, %v1754_v27  ;;  %v828_v46 = vrot.slane %v528_v60, %v3827_v36  ;;  %v832_v47 = vrot.slane %v528_v60, %v3830_v20 }
  0xbd   :  { %v1770_v48 = vcombine.low %v1761_v40, %v1768_v31  ;;  %v836_v50 = vrot.slane %v528_v60, %v3833_v30  ;;  %v1786_v38 = vcombine.low %v808_v15, %v812_v11  ;;  %v1787_v51 = vcombine.low %v816_v32, %v820_v41 }
  0xbe   :  { %2923 = vperm.xlu1 %3206, %v1736_v44   ;;  %v1777_v49 = vrot.slane %v1769_v45, %v3836_v37  ;;  %v1788_v23 = vcombine.low %v824_v43, %v828_v46  ;;  %v840_v52 = vrot.slane %v532_v39, %v3812_v16  ;;  %v844_v42 = vrot.slane %v532_v39, %v3815_v21  ;;  %v572_v58 = vpop.xlane.xlu1 %571 }
  0xbf   :  { %v1784_v55 = vrot.slane %v1770_v48, %v3836_v37  ;;  %v1789_v56 = vcombine.low %v832_v47, %v836_v50  ;;  %v1796_v24 = vrot.slane %v1786_v38, %v3836_v37  ;;  %v1803_v57 = vrot.slane %v1787_v51, %v3836_v37 }
  0xc0   :  { %v1810_v59 = vrot.slane %v1788_v23, %v3836_v37  ;;  %v848_v60 = vrot.slane %v532_v39, %v3818_v28  ;;  %v852_v61 = vrot.slane %v532_v39, %v3821_v29  ;;  %v856_v62 = vrot.slane %v532_v39, %v3824_v35 }
  0xc1   :  { %v1785_v63 = vcombine.low %v1777_v49, %v1784_v55  ;;  %v1817_v2 = vrot.slane %v1789_v56, %v3836_v37  ;;  %v1818_v9 = vcombine.low %v1796_v24, %v1803_v57  ;;  %v860_v33 = vrot.slane %v532_v39, %v3827_v36 }
  0xc2   :  { %v864_v53 = vrot.slane %v532_v39, %v3830_v20  ;;  %v868_v34 = vrot.slane %v532_v39, %v3833_v30  ;;  %v1835_v54 = vcombine.low %v840_v52, %v844_v42  ;;  %v1836_v0 = vcombine.low %v848_v60, %v852_v61 }
  0xc3   :  { %2926 = vperm.xlu1 %3206, %v1785_v63   ;;  %v1819_v3 = vcombine.low %v1810_v59, %v1817_v2  ;;  %v1826_v7 = vrot.slane %v1818_v9, %v3836_v37  ;;  %v1837_v1 = vcombine.low %v856_v62, %v860_v33  ;;  %v1160_v4 = vrot.slane %v572_v58, %v3812_v16 }
  0xc4   :  { %v3932_v5 = vpop.xlane.xlu0 %539  ;;  %v1838_v8 = vcombine.low %v864_v53, %v868_v34  ;;  %v1845_v12 = vrot.slane %v1835_v54, %v3836_v37  ;;  %v1852_v13 = vrot.slane %v1836_v0, %v3836_v37  ;;  %v1164_v14 = vrot.slane %v572_v58, %v3815_v21 }
  0xc5   :  { %v1833_v15 = vrot.slane %v1819_v3, %v3836_v37  ;;  %v1859_v17 = vrot.slane %v1837_v1, %v3836_v37  ;;  %v1168_v10 = vrot.slane %v572_v58, %v3818_v28  ;;  %v1172_v18 = vrot.slane %v572_v58, %v3821_v29 }
  0xc6   :  { %v580_v11 = vpop.xlane.xlu1 %579  ;;  %v1866_v6 = vrot.slane %v1838_v8, %v3836_v37  ;;  %v1867_v25 = vcombine.low %v1845_v12, %v1852_v13  ;;  %v1176_v27 = vrot.slane %v572_v58, %v3824_v35  ;;  %v1180_v32 = vrot.slane %v572_v58, %v3827_v36 }
  0xc7   :  { %v1224_v40 = vrot.slane %v580_v11, %v3812_v16  ;;  %v1228_v31 = vrot.slane %v580_v11, %v3815_v21  ;;  %v1232_v41 = vrot.slane %v580_v11, %v3818_v28  ;;  %v1236_v43 = vrot.slane %v580_v11, %v3821_v29 }
  0xc8   :  { %v1240_v44 = vrot.slane %v580_v11, %v3824_v35  ;;  %v1244_v45 = vrot.slane %v580_v11, %v3827_v36  ;;  %v1248_v46 = vrot.slane %v580_v11, %v3830_v20  ;;  %v1252_v47 = vrot.slane %v580_v11, %v3833_v30 }
  0xc9   :  { %v3952_v39 = vpop.xlane.xlu0 %575  ;;  %v2423_v48 = vcombine.low %v1224_v40, %v1228_v31  ;;  %v2424_v50 = vcombine.low %v1232_v41, %v1236_v43  ;;  %v1834_v38 = vcombine.low %v1826_v7, %v1833_v15  ;;  %v1868_v51 = vcombine.low %v1859_v17, %v1866_v6 }
  0xca   :  { %v2425_v49 = vcombine.low %v1240_v44, %v1244_v45  ;;  %v2426_v23 = vcombine.low %v1248_v46, %v1252_v47  ;;  %v1875_v52 = vrot.slane %v1867_v25, %v3836_v37  ;;  %v1184_v42 = vrot.slane %v572_v58, %v3830_v20 }
  0xcb   :  { %v2433_v55 = vrot.slane %v2423_v48, %v3836_v37  ;;  %v2440_v56 = vrot.slane %v2424_v50, %v3836_v37  ;;  %2929 = vperm.xlu1 %3206, %v1834_v38   ;;  %v1882_v24 = vrot.slane %v1868_v51, %v3836_v37  ;;  %v1188_v57 = vrot.slane %v572_v58, %v3833_v30 }
  0xcc   :  { %v2447_v59 = vrot.slane %v2425_v49, %v3836_v37  ;;  %v2454_v60 = vrot.slane %v2426_v23, %v3836_v37  ;;  %v2325_v61 = vcombine.low %v1160_v4, %v1164_v14  ;;  %v2326_v62 = vcombine.low %v1168_v10, %v1172_v18 }
  0xcd   :  { %v2455_v63 = vcombine.low %v2433_v55, %v2440_v56  ;;  %v1883_v2 = vcombine.low %v1875_v52, %v1882_v24  ;;  %v2327_v9 = vcombine.low %v1176_v27, %v1180_v32  ;;  %v2328_v33 = vcombine.low %v1184_v42, %v1188_v57 }
  0xce   :  { %v584_v53 = vpop.xlane.xlu0 %583  ;;  %v2456_v34 = vcombine.low %v2447_v59, %v2454_v60  ;;  %v2335_v54 = vrot.slane %v2325_v61, %v3836_v37  ;;  %v2342_v0 = vrot.slane %v2326_v62, %v3836_v37  ;;  %v1192_v3 = vrot.slane %v3952_v39, %v3812_v16 }
  0xcf   :  { %v2463_v58 = vrot.slane %v2455_v63, %v3836_v37  ;;  %2932 = vperm.xlu1 %3206, %v1883_v2   ;;  %v1256_v7 = vrot.slane %v584_v53, %v3812_v16  ;;  %v1260_v1 = vrot.slane %v584_v53, %v3815_v21  ;;  %v1264_v4 = vrot.slane %v584_v53, %v3818_v28 }
  0xd0   :  { %v2470_v8 = vrot.slane %v2456_v34, %v3836_v37  ;;  %v1268_v12 = vrot.slane %v584_v53, %v3821_v29  ;;  %v1272_v13 = vrot.slane %v584_v53, %v3824_v35  ;;  %v1276_v14 = vrot.slane %v584_v53, %v3827_v36 }
  0xd1   :  { %v1280_v15 = vrot.slane %v584_v53, %v3830_v20  ;;  %v1284_v17 = vrot.slane %v584_v53, %v3833_v30  ;;  %v2472_v10 = vcombine.low %v1256_v7, %v1260_v1  ;;  %v2349_v18 = vrot.slane %v2327_v9, %v3836_v37 }
  0xd2   :  { %v2471_v11 = vcombine.low %v2463_v58, %v2470_v8  ;;  %v2473_v6 = vcombine.low %v1264_v4, %v1268_v12  ;;  %v2474_v25 = vcombine.low %v1272_v13, %v1276_v14  ;;  %v2356_v27 = vrot.slane %v2328_v33, %v3836_v37 }
  0xd3   :  { %v2475_v32 = vcombine.low %v1280_v15, %v1284_v17  ;;  %v2482_v40 = vrot.slane %v2472_v10, %v3836_v37  ;;  %v2357_v31 = vcombine.low %v2335_v54, %v2342_v0  ;;  %v1196_v41 = vrot.slane %v3952_v39, %v3815_v21 }
  0xd4   :  { %2968 = vperm.xlu0 %3205, %v2471_v11   ;;  %v2489_v43 = vrot.slane %v2473_v6, %v3836_v37  ;;  %v2496_v44 = vrot.slane %v2474_v25, %v3836_v37  ;;  %v2358_v45 = vcombine.low %v2349_v18, %v2356_v27  ;;  %v1200_v46 = vrot.slane %v3952_v39, %v3818_v28 }
  0xd5   :  { %v588_v47 = vpop.xlane.xlu1 %587  ;;  %v2503_v48 = vrot.slane %v2475_v32, %v3836_v37  ;;  %v2365_v50 = vrot.slane %v2357_v31, %v3836_v37  ;;  %v1204_v38 = vrot.slane %v3952_v39, %v3821_v29  ;;  %v1208_v51 = vrot.slane %v3952_v39, %v3824_v35 }
  0xd6   :  { %v2504_v49 = vcombine.low %v2482_v40, %v2489_v43  ;;  %v2372_v23 = vrot.slane %v2358_v45, %v3836_v37  ;;  %v1288_v52 = vrot.slane %v588_v47, %v3812_v16  ;;  %v1292_v42 = vrot.slane %v588_v47, %v3815_v21 }
  0xd7   :  { %v2505_v55 = vcombine.low %v2496_v44, %v2503_v48  ;;  %v1296_v56 = vrot.slane %v588_v47, %v3818_v28  ;;  %v1300_v24 = vrot.slane %v588_v47, %v3821_v29  ;;  %v1304_v57 = vrot.slane %v588_v47, %v3824_v35 }
  0xd8   :  { %v2512_v59 = vrot.slane %v2504_v49, %v3836_v37  ;;  %v2373_v60 = vcombine.low %v2365_v50, %v2372_v23  ;;  %v1308_v61 = vrot.slane %v588_v47, %v3827_v36  ;;  %v1312_v62 = vrot.slane %v588_v47, %v3830_v20 }
  0xd9   :  { %v2519_v63 = vrot.slane %v2505_v55, %v3836_v37  ;;  %v1316_v2 = vrot.slane %v588_v47, %v3833_v30  ;;  %v2521_v9 = vcombine.low %v1288_v52, %v1292_v42  ;;  %v2522_v33 = vcombine.low %v1296_v56, %v1300_v24  ;;  %v592_v53 = vpop.xlane.xlu1 %591 }
  0xda   :  { %2962 = vperm.xlu1 %3206, %v2373_v60   ;;  %v2523_v34 = vcombine.low %v1304_v57, %v1308_v61  ;;  %v1212_v54 = vrot.slane %v3952_v39, %v3827_v36  ;;  %v1216_v0 = vrot.slane %v3952_v39, %v3830_v20  ;;  %v1220_v58 = vrot.slane %v3952_v39, %v3833_v30 }
  0xdb   :  { %v2520_v7 = vcombine.low %v2512_v59, %v2519_v63  ;;  %v2524_v1 = vcombine.low %v1312_v62, %v1316_v2  ;;  %v2531_v4 = vrot.slane %v2521_v9, %v3836_v37  ;;  %v2538_v8 = vrot.slane %v2522_v33, %v3836_v37 }
  0xdc   :  { %v2545_v12 = vrot.slane %v2523_v34, %v3836_v37  ;;  %v2374_v13 = vcombine.low %v1192_v3, %v1196_v41  ;;  %v2375_v14 = vcombine.low %v1200_v46, %v1204_v38  ;;  %v2376_v15 = vcombine.low %v1208_v51, %v1212_v54 }
  0xdd   :  { %2971 = vperm.xlu0 %3205, %v2520_v7   ;;  %v2552_v17 = vrot.slane %v2524_v1, %v3836_v37  ;;  %v2553_v10 = vcombine.low %v2531_v4, %v2538_v8  ;;  %v2377_v18 = vcombine.low %v1216_v0, %v1220_v58  ;;  %v1320_v11 = vrot.slane %v592_v53, %v3812_v16  ;;  %v596_v61 = vpop.xlane.xlu1 %595 }
  0xde   :  { %v2384_v39 = vrot.slane %v2374_v13, %v3836_v37  ;;  %v2391_v6 = vrot.slane %v2375_v14, %v3836_v37  ;;  %v2398_v25 = vrot.slane %v2376_v15, %v3836_v37  ;;  %v1324_v27 = vrot.slane %v592_v53, %v3815_v21 }
  0xdf   :  { %v2554_v32 = vcombine.low %v2545_v12, %v2552_v17  ;;  %v2561_v3 = vrot.slane %v2553_v10, %v3836_v37  ;;  %v2405_v40 = vrot.slane %v2377_v18, %v3836_v37  ;;  %v1328_v31 = vrot.slane %v592_v53, %v3818_v28 }
  0xe0   :  { %v2406_v41 = vcombine.low %v2384_v39, %v2391_v6  ;;  %v1332_v43 = vrot.slane %v592_v53, %v3821_v29  ;;  %v1336_v44 = vrot.slane %v592_v53, %v3824_v35  ;;  %v1340_v45 = vrot.slane %v592_v53, %v3827_v36 }
  0xe1   :  { %v2568_v46 = vrot.slane %v2554_v32, %v3836_v37  ;;  %v2407_v47 = vcombine.low %v2398_v25, %v2405_v40  ;;  %v1344_v48 = vrot.slane %v592_v53, %v3830_v20  ;;  %v1348_v50 = vrot.slane %v592_v53, %v3833_v30 }
  0xe2   :  { %v2414_v38 = vrot.slane %v2406_v41, %v3836_v37  ;;  %v2570_v51 = vcombine.low %v1320_v11, %v1324_v27  ;;  %v2571_v49 = vcombine.low %v1328_v31, %v1332_v43  ;;  %v2572_v23 = vcombine.low %v1336_v44, %v1340_v45 }
  0xe3   :  { %v2569_v52 = vcombine.low %v2561_v3, %v2568_v46  ;;  %v2421_v42 = vrot.slane %v2407_v47, %v3836_v37  ;;  %v2573_v55 = vcombine.low %v1344_v48, %v1348_v50  ;;  %v872_v56 = vrot.slane %v3903_v19, %v3812_v16 }
  0xe4   :  { %v2580_v24 = vrot.slane %v2570_v51, %v3836_v37  ;;  %v2587_v57 = vrot.slane %v2571_v49, %v3836_v37  ;;  %v2594_v59 = vrot.slane %v2572_v23, %v3836_v37  ;;  %v876_v60 = vrot.slane %v3903_v19, %v3815_v21  ;;  %v600_v51 = vpop.xlane.xlu1 %599 }
  0xe5   :  { %2974 = vperm.xlu0 %3205, %v2569_v52   ;;  %v2422_v62 = vcombine.low %v2414_v38, %v2421_v42  ;;  %v2601_v63 = vrot.slane %v2573_v55, %v3836_v37  ;;  %v880_v2 = vrot.slane %v3903_v19, %v3818_v28  ;;  %v884_v9 = vrot.slane %v3903_v19, %v3821_v29 }
  0xe6   :  { %v2602_v33 = vcombine.low %v2580_v24, %v2587_v57  ;;  %v888_v53 = vrot.slane %v3903_v19, %v3824_v35  ;;  %v892_v34 = vrot.slane %v3903_v19, %v3827_v36  ;;  %v896_v54 = vrot.slane %v3903_v19, %v3830_v20 }
  0xe7   :  { %2965 = vperm.xlu1 %3206, %v2422_v62   ;;  %v2603_v0 = vcombine.low %v2594_v59, %v2601_v63  ;;  %v900_v58 = vrot.slane %v3903_v19, %v3833_v30  ;;  %v1884_v7 = vcombine.low %v872_v56, %v876_v60  ;;  %v1885_v1 = vcombine.low %v880_v2, %v884_v9 }
  0xe8   :  { %v2610_v4 = vrot.slane %v2602_v33, %v3836_v37  ;;  %v1886_v8 = vcombine.low %v888_v53, %v892_v34  ;;  %v1352_v12 = vrot.slane %v596_v61, %v3812_v16  ;;  %v1356_v13 = vrot.slane %v596_v61, %v3815_v21 }
  0xe9   :  { %v2617_v14 = vrot.slane %v2603_v0, %v3836_v37  ;;  %v1887_v15 = vcombine.low %v896_v54, %v900_v58  ;;  %v1894_v17 = vrot.slane %v1884_v7, %v3836_v37  ;;  %v1901_v10 = vrot.slane %v1885_v1, %v3836_v37 }
  0xea   :  { %v1908_v18 = vrot.slane %v1886_v8, %v3836_v37  ;;  %v1360_v19 = vrot.slane %v596_v61, %v3818_v28  ;;  %v1364_v11 = vrot.slane %v596_v61, %v3821_v29  ;;  %v1368_v39 = vrot.slane %v596_v61, %v3824_v35 }
  0xeb   :  { %v2618_v6 = vcombine.low %v2610_v4, %v2617_v14  ;;  %v1915_v25 = vrot.slane %v1887_v15, %v3836_v37  ;;  %v1916_v27 = vcombine.low %v1894_v17, %v1901_v10  ;;  %v1372_v32 = vrot.slane %v596_v61, %v3827_v36  ;;  %v604_v4 = vpop.xlane.xlu1 %603 }
  0xec   :  { %v1376_v3 = vrot.slane %v596_v61, %v3830_v20  ;;  %v1380_v40 = vrot.slane %v596_v61, %v3833_v30  ;;  %v2619_v31 = vcombine.low %v1352_v12, %v1356_v13  ;;  %v2620_v41 = vcombine.low %v1360_v19, %v1364_v11 }
  0xed   :  { %2977 = vperm.xlu0 %3205, %v2618_v6   ;;  %v1917_v43 = vcombine.low %v1908_v18, %v1915_v25  ;;  %v1924_v44 = vrot.slane %v1916_v27, %v3836_v37  ;;  %v2621_v45 = vcombine.low %v1368_v39, %v1372_v32  ;;  %v904_v46 = vrot.slane %v3932_v5, %v3812_v16 }
  0xee   :  { %v2622_v47 = vcombine.low %v1376_v3, %v1380_v40  ;;  %v2629_v48 = vrot.slane %v2619_v31, %v3836_v37  ;;  %v2636_v50 = vrot.slane %v2620_v41, %v3836_v37  ;;  %v908_v38 = vrot.slane %v3932_v5, %v3815_v21 }
  0xef   :  { %v1931_v49 = vrot.slane %v1917_v43, %v3836_v37  ;;  %v2643_v23 = vrot.slane %v2621_v45, %v3836_v37  ;;  %v912_v52 = vrot.slane %v3932_v5, %v3818_v28  ;;  %v916_v42 = vrot.slane %v3932_v5, %v3821_v29 }
  0xf0   :  { %v2650_v55 = vrot.slane %v2622_v47, %v3836_v37  ;;  %v2651_v56 = vcombine.low %v2629_v48, %v2636_v50  ;;  %v920_v24 = vrot.slane %v3932_v5, %v3824_v35  ;;  %v924_v57 = vrot.slane %v3932_v5, %v3827_v36 }
  0xf1   :  { %v1932_v59 = vcombine.low %v1924_v44, %v1931_v49  ;;  %v928_v60 = vrot.slane %v3932_v5, %v3830_v20  ;;  %v932_v61 = vrot.slane %v3932_v5, %v3833_v30  ;;  %v1933_v62 = vcombine.low %v904_v46, %v908_v38  ;;  %v544_v44 = vpop.xlane.xlu0 %543 }
  0xf2   :  { %v2652_v63 = vcombine.low %v2643_v23, %v2650_v55  ;;  %v2659_v2 = vrot.slane %v2651_v56, %v3836_v37  ;;  %v1934_v9 = vcombine.low %v912_v52, %v916_v42  ;;  %v1935_v33 = vcombine.low %v920_v24, %v924_v57 }
  0xf3   :  { %2935 = vperm.xlu1 %3206, %v1932_v59   ;;  %v1936_v53 = vcombine.low %v928_v60, %v932_v61  ;;  %v1943_v34 = vrot.slane %v1933_v62, %v3836_v37  ;;  %v1384_v54 = vrot.slane %v600_v51, %v3812_v16  ;;  %v1388_v0 = vrot.slane %v600_v51, %v3815_v21 }
  0xf4   :  { %v2666_v58 = vrot.slane %v2652_v63, %v3836_v37  ;;  %v1950_v7 = vrot.slane %v1934_v9, %v3836_v37  ;;  %v1957_v5 = vrot.slane %v1935_v33, %v3836_v37  ;;  %v1392_v1 = vrot.slane %v600_v51, %v3818_v28 }
  0xf5   :  { %v1964_v8 = vrot.slane %v1936_v53, %v3836_v37  ;;  %v1396_v12 = vrot.slane %v600_v51, %v3821_v29  ;;  %v1400_v13 = vrot.slane %v600_v51, %v3824_v35  ;;  %v1404_v14 = vrot.slane %v600_v51, %v3827_v36 }
  0xf6   :  { %v2667_v15 = vcombine.low %v2659_v2, %v2666_v58  ;;  %v1965_v17 = vcombine.low %v1943_v34, %v1950_v7  ;;  %v1408_v10 = vrot.slane %v600_v51, %v3830_v20  ;;  %v1412_v18 = vrot.slane %v600_v51, %v3833_v30  ;;  %v608_v2 = vpop.xlane.xlu1 %607 }
  0xf7   :  { %v1966_v19 = vcombine.low %v1957_v5, %v1964_v8  ;;  %v2668_v11 = vcombine.low %v1384_v54, %v1388_v0  ;;  %v2669_v39 = vcombine.low %v1392_v1, %v1396_v12  ;;  %v2670_v6 = vcombine.low %v1400_v13, %v1404_v14 }
  0xf8   :  { %2980 = vperm.xlu0 %3205, %v2667_v15   ;;  %v1973_v25 = vrot.slane %v1965_v17, %v3836_v37  ;;  %v2671_v27 = vcombine.low %v1408_v10, %v1412_v18  ;;  %v1416_v32 = vrot.slane %v604_v4, %v3812_v16  ;;  %v1420_v3 = vrot.slane %v604_v4, %v3815_v21 }
  0xf9   :  { %v1980_v40 = vrot.slane %v1966_v19, %v3836_v37  ;;  %v2678_v31 = vrot.slane %v2668_v11, %v3836_v37  ;;  %v2685_v41 = vrot.slane %v2669_v39, %v3836_v37  ;;  %v2692_v43 = vrot.slane %v2670_v6, %v3836_v37 }
  0xfa   :  { %v2699_v45 = vrot.slane %v2671_v27, %v3836_v37  ;;  %v1424_v46 = vrot.slane %v604_v4, %v3818_v28  ;;  %v1428_v47 = vrot.slane %v604_v4, %v3821_v29  ;;  %v1432_v48 = vrot.slane %v604_v4, %v3824_v35  ;;  %v548_v27 = vpop.xlane.xlu0 %547 }
  0xfb   :  { %v1981_v50 = vcombine.low %v1973_v25, %v1980_v40  ;;  %v2700_v38 = vcombine.low %v2678_v31, %v2685_v41  ;;  %v1436_v51 = vrot.slane %v604_v4, %v3827_v36  ;;  %v1440_v49 = vrot.slane %v604_v4, %v3830_v20 }
  0xfc   :  { %v2701_v23 = vcombine.low %v2692_v43, %v2699_v45  ;;  %v1444_v52 = vrot.slane %v604_v4, %v3833_v30  ;;  %v2717_v42 = vcombine.low %v1416_v32, %v1420_v3  ;;  %v2718_v55 = vcombine.low %v1424_v46, %v1428_v47 }
  0xfd   :  { %2938 = vperm.xlu1 %3206, %v1981_v50   ;;  %v2708_v56 = vrot.slane %v2700_v38, %v3836_v37  ;;  %v2719_v24 = vcombine.low %v1432_v48, %v1436_v51  ;;  %v936_v57 = vrot.slane %v544_v44, %v3812_v16  ;;  %v940_v59 = vrot.slane %v544_v44, %v3815_v21 }
  0xfe   :  { %v2715_v60 = vrot.slane %v2701_v23, %v3836_v37  ;;  %v2720_v61 = vcombine.low %v1440_v49, %v1444_v52  ;;  %v2727_v62 = vrot.slane %v2717_v42, %v3836_v37  ;;  %v2734_v63 = vrot.slane %v2718_v55, %v3836_v37 }
  0xff   :  { %v2741_v9 = vrot.slane %v2719_v24, %v3836_v37  ;;  %v944_v33 = vrot.slane %v544_v44, %v3818_v28  ;;  %v948_v53 = vrot.slane %v544_v44, %v3821_v29  ;;  %v952_v34 = vrot.slane %v544_v44, %v3824_v35  ;;  %v612_v24 = vpop.xlane.xlu1 %611 }
 0x100   :  { %v2716_v54 = vcombine.low %v2708_v56, %v2715_v60  ;;  %v2748_v0 = vrot.slane %v2720_v61, %v3836_v37  ;;  %v2749_v58 = vcombine.low %v2727_v62, %v2734_v63  ;;  %v956_v7 = vrot.slane %v544_v44, %v3827_v36 }
 0x101   :  { %v960_v5 = vrot.slane %v544_v44, %v3830_v20  ;;  %v964_v1 = vrot.slane %v544_v44, %v3833_v30  ;;  %v1982_v4 = vcombine.low %v936_v57, %v940_v59  ;;  %v1983_v8 = vcombine.low %v944_v33, %v948_v53 }
 0x102   :  { %2983 = vperm.xlu0 %3205, %v2716_v54   ;;  %v2750_v12 = vcombine.low %v2741_v9, %v2748_v0  ;;  %v2757_v13 = vrot.slane %v2749_v58, %v3836_v37  ;;  %v1984_v14 = vcombine.low %v952_v34, %v956_v7  ;;  %v1448_v15 = vrot.slane %v608_v2, %v3812_v16 }
 0x103   :  { %v1985_v17 = vcombine.low %v960_v5, %v964_v1  ;;  %v1992_v10 = vrot.slane %v1982_v4, %v3836_v37  ;;  %v1999_v18 = vrot.slane %v1983_v8, %v3836_v37  ;;  %v1452_v19 = vrot.slane %v608_v2, %v3815_v21 }
 0x104   :  { %v2764_v11 = vrot.slane %v2750_v12, %v3836_v37  ;;  %v2006_v39 = vrot.slane %v1984_v14, %v3836_v37  ;;  %v1456_v6 = vrot.slane %v608_v2, %v3818_v28  ;;  %v1460_v25 = vrot.slane %v608_v2, %v3821_v29 }
 0x105   :  { %v2013_v32 = vrot.slane %v1985_v17, %v3836_v37  ;;  %v2014_v3 = vcombine.low %v1992_v10, %v1999_v18  ;;  %v1464_v40 = vrot.slane %v608_v2, %v3824_v35  ;;  %v1468_v31 = vrot.slane %v608_v2, %v3827_v36 }
 0x106   :  { %v2765_v41 = vcombine.low %v2757_v13, %v2764_v11  ;;  %v1472_v43 = vrot.slane %v608_v2, %v3830_v20  ;;  %v1476_v44 = vrot.slane %v608_v2, %v3833_v30  ;;  %v2766_v45 = vcombine.low %v1448_v15, %v1452_v19  ;;  %v552_v13 = vpop.xlane.xlu0 %551 }
 0x107   :  { %v2015_v46 = vcombine.low %v2006_v39, %v2013_v32  ;;  %v2022_v47 = vrot.slane %v2014_v3, %v3836_v37  ;;  %v2767_v48 = vcombine.low %v1456_v6, %v1460_v25  ;;  %v2768_v50 = vcombine.low %v1464_v40, %v1468_v31 }
 0x108   :  { %2986 = vperm.xlu0 %3205, %v2765_v41   ;;  %v2769_v38 = vcombine.low %v1472_v43, %v1476_v44  ;;  %v2776_v51 = vrot.slane %v2766_v45, %v3836_v37  ;;  %v968_v49 = vrot.slane %v548_v27, %v3812_v16  ;;  %v972_v23 = vrot.slane %v548_v27, %v3815_v21 }
 0x109   :  { %v2029_v52 = vrot.slane %v2015_v46, %v3836_v37  ;;  %v2783_v42 = vrot.slane %v2767_v48, %v3836_v37  ;;  %v2790_v55 = vrot.slane %v2768_v50, %v3836_v37  ;;  %v976_v56 = vrot.slane %v548_v27, %v3818_v28 }
 0x10a   :  { %v2797_v57 = vrot.slane %v2769_v38, %v3836_v37  ;;  %v980_v59 = vrot.slane %v548_v27, %v3821_v29  ;;  %v984_v60 = vrot.slane %v548_v27, %v3824_v35  ;;  %v988_v61 = vrot.slane %v548_v27, %v3827_v36 }
 0x10b   :  { %v2030_v62 = vcombine.low %v2022_v47, %v2029_v52  ;;  %v2798_v63 = vcombine.low %v2776_v51, %v2783_v42  ;;  %v992_v2 = vrot.slane %v548_v27, %v3830_v20  ;;  %v996_v9 = vrot.slane %v548_v27, %v3833_v30  ;;  %v616_v47 = vpop.xlane.xlu1 %615 }
 0x10c   :  { %v2799_v33 = vcombine.low %v2790_v55, %v2797_v57  ;;  %v2031_v53 = vcombine.low %v968_v49, %v972_v23  ;;  %v2032_v34 = vcombine.low %v976_v56, %v980_v59  ;;  %v2033_v54 = vcombine.low %v984_v60, %v988_v61  ;;  %v556_v59 = vpop.xlane.xlu0 %555 }
 0x10d   :  { %2941 = vperm.xlu1 %3206, %v2030_v62   ;;  %v2806_v0 = vrot.slane %v2798_v63, %v3836_v37  ;;  %v2034_v58 = vcombine.low %v992_v2, %v996_v9  ;;  %v1480_v7 = vrot.slane %v612_v24, %v3812_v16  ;;  %v1484_v5 = vrot.slane %v612_v24, %v3815_v21 }
 0x10e   :  { %v2813_v1 = vrot.slane %v2799_v33, %v3836_v37  ;;  %v2041_v4 = vrot.slane %v2031_v53, %v3836_v37  ;;  %v2048_v8 = vrot.slane %v2032_v34, %v3836_v37  ;;  %v2055_v12 = vrot.slane %v2033_v54, %v3836_v37 }
 0x10f   :  { %v2062_v14 = vrot.slane %v2034_v58, %v3836_v37  ;;  %v1488_v15 = vrot.slane %v612_v24, %v3818_v28  ;;  %v1492_v17 = vrot.slane %v612_v24, %v3821_v29  ;;  %v1496_v10 = vrot.slane %v612_v24, %v3824_v35 }
 0x110   :  { %v2814_v18 = vcombine.low %v2806_v0, %v2813_v1  ;;  %v2063_v19 = vcombine.low %v2041_v4, %v2048_v8  ;;  %v1500_v11 = vrot.slane %v612_v24, %v3827_v36  ;;  %v1504_v39 = vrot.slane %v612_v24, %v3830_v20 }
 0x111   :  { %v2064_v6 = vcombine.low %v2055_v12, %v2062_v14  ;;  %v1508_v25 = vrot.slane %v612_v24, %v3833_v30  ;;  %v2815_v27 = vcombine.low %v1480_v7, %v1484_v5  ;;  %v2816_v32 = vcombine.low %v1488_v15, %v1492_v17 }
 0x112   :  { %2989 = vperm.xlu0 %3205, %v2814_v18   ;;  %v2071_v3 = vrot.slane %v2063_v19, %v3836_v37  ;;  %v2817_v40 = vcombine.low %v1496_v10, %v1500_v11  ;;  %v1000_v31 = vrot.slane %v552_v13, %v3812_v16  ;;  %v1004_v41 = vrot.slane %v552_v13, %v3815_v21  ;;  %v560_v19 = vpop.xlane.xlu0 %559 }
 0x113   :  { %v2078_v43 = vrot.slane %v2064_v6, %v3836_v37  ;;  %v2818_v44 = vcombine.low %v1504_v39, %v1508_v25  ;;  %v2825_v45 = vrot.slane %v2815_v27, %v3836_v37  ;;  %v2832_v46 = vrot.slane %v2816_v32, %v3836_v37 }
 0x114   :  { %v2839_v48 = vrot.slane %v2817_v40, %v3836_v37  ;;  %v1008_v50 = vrot.slane %v552_v13, %v3818_v28  ;;  %v1012_v38 = vrot.slane %v552_v13, %v3821_v29  ;;  %v1016_v51 = vrot.slane %v552_v13, %v3824_v35 }
 0x115   :  { %v2079_v49 = vcombine.low %v2071_v3, %v2078_v43  ;;  %v2846_v23 = vrot.slane %v2818_v44, %v3836_v37  ;;  %v2847_v52 = vcombine.low %v2825_v45, %v2832_v46  ;;  %v1020_v42 = vrot.slane %v552_v13, %v3827_v36 }
 0x116   :  { %v1024_v55 = vrot.slane %v552_v13, %v3830_v20  ;;  %v1028_v56 = vrot.slane %v552_v13, %v3833_v30  ;;  %v2080_v24 = vcombine.low %v1000_v31, %v1004_v41  ;;  %v2081_v57 = vcombine.low %v1008_v50, %v1012_v38 }
 0x117   :  { %2944 = vperm.xlu1 %3206, %v2079_v49   ;;  %v2848_v60 = vcombine.low %v2839_v48, %v2846_v23  ;;  %v2855_v61 = vrot.slane %v2847_v52, %v3836_v37  ;;  %v2082_v62 = vcombine.low %v1016_v51, %v1020_v42  ;;  %v1512_v63 = vrot.slane %v616_v47, %v3812_v16 }
 0x118   :  { %v2083_v2 = vcombine.low %v1024_v55, %v1028_v56  ;;  %v2090_v9 = vrot.slane %v2080_v24, %v3836_v37  ;;  %v2097_v33 = vrot.slane %v2081_v57, %v3836_v37  ;;  %v1516_v53 = vrot.slane %v616_v47, %v3815_v21  ;;  %v564_v56 = vpop.xlane.xlu0 %563 }
 0x119   :  { %v2862_v34 = vrot.slane %v2848_v60, %v3836_v37  ;;  %v2104_v54 = vrot.slane %v2082_v62, %v3836_v37  ;;  %v1520_v0 = vrot.slane %v616_v47, %v3818_v28  ;;  %v1524_v58 = vrot.slane %v616_v47, %v3821_v29 }
 0x11a   :  { %v2111_v7 = vrot.slane %v2083_v2, %v3836_v37  ;;  %v2112_v5 = vcombine.low %v2090_v9, %v2097_v33  ;;  %v1528_v1 = vrot.slane %v616_v47, %v3824_v35  ;;  %v1532_v4 = vrot.slane %v616_v47, %v3827_v36 }
 0x11b   :  { %v2863_v8 = vcombine.low %v2855_v61, %v2862_v34  ;;  %v1536_v12 = vrot.slane %v616_v47, %v3830_v20  ;;  %v1540_v13 = vrot.slane %v616_v47, %v3833_v30  ;;  %v2864_v14 = vcombine.low %v1512_v63, %v1516_v53 }
 0x11c   :  { %v2113_v15 = vcombine.low %v2104_v54, %v2111_v7  ;;  %v2120_v17 = vrot.slane %v2112_v5, %v3836_v37  ;;  %v2865_v10 = vcombine.low %v1520_v0, %v1524_v58  ;;  %v2866_v18 = vcombine.low %v1528_v1, %v1532_v4 }
 0x11d   :  { %2992 = vperm.xlu0 %3205, %v2863_v8   ;;  %v2867_v11 = vcombine.low %v1536_v12, %v1540_v13  ;;  %v2874_v39 = vrot.slane %v2864_v14, %v3836_v37  ;;  %v1032_v6 = vrot.slane %v556_v59, %v3812_v16  ;;  %v1036_v25 = vrot.slane %v556_v59, %v3815_v21 }
 0x11e   :  { %v2127_v27 = vrot.slane %v2113_v15, %v3836_v37  ;;  %v2881_v32 = vrot.slane %v2865_v10, %v3836_v37  ;;  %v2888_v3 = vrot.slane %v2866_v18, %v3836_v37  ;;  %v1040_v40 = vrot.slane %v556_v59, %v3818_v28 }
 0x11f   :  { %v2895_v31 = vrot.slane %v2867_v11, %v3836_v37  ;;  %v1044_v41 = vrot.slane %v556_v59, %v3821_v29  ;;  %v1048_v43 = vrot.slane %v556_v59, %v3824_v35  ;;  %v1052_v44 = vrot.slane %v556_v59, %v3827_v36 }
 0x120   :  { %v2128_v45 = vcombine.low %v2120_v17, %v2127_v27  ;;  %v2896_v46 = vcombine.low %v2874_v39, %v2881_v32  ;;  %v1056_v47 = vrot.slane %v556_v59, %v3830_v20  ;;  %v1060_v48 = vrot.slane %v556_v59, %v3833_v30  ;;  %v568_v17 = vpop.xlane.xlu0 %567 }
 0x121   :  { %v2897_v50 = vcombine.low %v2888_v3, %v2895_v31  ;;  %v2129_v38 = vcombine.low %v1032_v6, %v1036_v25  ;;  %v2130_v51 = vcombine.low %v1040_v40, %v1044_v41  ;;  %v2131_v49 = vcombine.low %v1048_v43, %v1052_v44 }
 0x122   :  { %2947 = vperm.xlu1 %3206, %v2128_v45   ;;  %v2904_v23 = vrot.slane %v2896_v46, %v3836_v37  ;;  %v2132_v52 = vcombine.low %v1056_v47, %v1060_v48  ;;  %v1064_v42 = vrot.slane %v560_v19, %v3812_v16  ;;  %v1068_v55 = vrot.slane %v560_v19, %v3815_v21 }
 0x123   :  { %v2911_v24 = vrot.slane %v2897_v50, %v3836_v37  ;;  %v2139_v57 = vrot.slane %v2129_v38, %v3836_v37  ;;  %v2146_v60 = vrot.slane %v2130_v51, %v3836_v37  ;;  %v2153_v59 = vrot.slane %v2131_v49, %v3836_v37 }
 0x124   :  { %v2160_v61 = vrot.slane %v2132_v52, %v3836_v37  ;;  %v1072_v62 = vrot.slane %v560_v19, %v3818_v28  ;;  %v1076_v63 = vrot.slane %v560_v19, %v3821_v29  ;;  %v1080_v2 = vrot.slane %v560_v19, %v3824_v35 }
 0x125   :  { %v2912_v9 = vcombine.low %v2904_v23, %v2911_v24  ;;  %v2161_v33 = vcombine.low %v2139_v57, %v2146_v60  ;;  %v1084_v53 = vrot.slane %v560_v19, %v3827_v36  ;;  %v1088_v34 = vrot.slane %v560_v19, %v3830_v20 }
 0x126   :  { %v2162_v54 = vcombine.low %v2153_v59, %v2160_v61  ;;  %v1092_v0 = vrot.slane %v560_v19, %v3833_v30  ;;  %v2178_v58 = vcombine.low %v1064_v42, %v1068_v55  ;;  %v2179_v7 = vcombine.low %v1072_v62, %v1076_v63 }
 0x127   :  { %2995 = vperm.xlu0 %3205, %v2912_v9   ;;  %v2169_v5 = vrot.slane %v2161_v33, %v3836_v37  ;;  %v2180_v1 = vcombine.low %v1080_v2, %v1084_v53  ;;  %v1096_v4 = vrot.slane %v564_v56, %v3812_v16  ;;  %v1100_v8 = vrot.slane %v564_v56, %v3815_v21 }
 0x128   :  { %v2176_v12 = vrot.slane %v2162_v54, %v3836_v37  ;;  %v2181_v13 = vcombine.low %v1088_v34, %v1092_v0  ;;  %v2188_v14 = vrot.slane %v2178_v58, %v3836_v37  ;;  %v2195_v15 = vrot.slane %v2179_v7, %v3836_v37 }
 0x129   :  { %v2202_v10 = vrot.slane %v2180_v1, %v3836_v37  ;;  %v1104_v18 = vrot.slane %v564_v56, %v3818_v28  ;;  %v1108_v19 = vrot.slane %v564_v56, %v3821_v29  ;;  %v1112_v11 = vrot.slane %v564_v56, %v3824_v35 }
 0x12a   :  { %v2177_v39 = vcombine.low %v2169_v5, %v2176_v12  ;;  %v2209_v6 = vrot.slane %v2181_v13, %v3836_v37  ;;  %v2210_v25 = vcombine.low %v2188_v14, %v2195_v15  ;;  %v1116_v27 = vrot.slane %v564_v56, %v3827_v36 }
 0x12b   :  { %v1120_v32 = vrot.slane %v564_v56, %v3830_v20  ;;  %v1124_v3 = vrot.slane %v564_v56, %v3833_v30  ;;  %v2227_v40 = vcombine.low %v1096_v4, %v1100_v8  ;;  %v2228_v31 = vcombine.low %v1104_v18, %v1108_v19 }
 0x12c   :  { %2950 = vperm.xlu1 %3206, %v2177_v39   ;;  %v2211_v41 = vcombine.low %v2202_v10, %v2209_v6  ;;  %v2218_v43 = vrot.slane %v2210_v25, %v3836_v37  ;;  %v2229_v44 = vcombine.low %v1112_v11, %v1116_v27  ;;  %v1128_v45 = vrot.slane %v568_v17, %v3812_v16 }
 0x12d   :  { %v2230_v46 = vcombine.low %v1120_v32, %v1124_v3  ;;  %v2237_v47 = vrot.slane %v2227_v40, %v3836_v37  ;;  %v2244_v48 = vrot.slane %v2228_v31, %v3836_v37  ;;  %v1132_v50 = vrot.slane %v568_v17, %v3815_v21 }
 0x12e   :  { %v2225_v38 = vrot.slane %v2211_v41, %v3836_v37  ;;  %v2251_v51 = vrot.slane %v2229_v44, %v3836_v37  ;;  %v1136_v49 = vrot.slane %v568_v17, %v3818_v28  ;;  %v1140_v23 = vrot.slane %v568_v17, %v3821_v29  ;;  %v2915_v4 = vpop.permute.xlu0 %2914 }
 0x12f   :  { %v2258_v52 = vrot.slane %v2230_v46, %v3836_v37  ;;  %v2259_v42 = vcombine.low %v2237_v47, %v2244_v48  ;;  %v1144_v16 = vrot.slane %v568_v17, %v3824_v35  ;;  %v1148_v55 = vrot.slane %v568_v17, %v3827_v36 }
 0x130   :  { %v2226_v56 = vcombine.low %v2218_v43, %v2225_v38  ;;  %v1152_v24 = vrot.slane %v568_v17, %v3830_v20  ;;  %v1156_v21 = vrot.slane %v568_v17, %v3833_v30  ;;  %v2276_v57 = vcombine.low %v1128_v45, %v1132_v50 }
 0x131   :  { %v2260_v60 = vcombine.low %v2251_v51, %v2258_v52  ;;  %v2267_v59 = vrot.slane %v2259_v42, %v3836_v37  ;;  %v2277_v61 = vcombine.low %v1136_v49, %v1140_v23  ;;  %v2278_v28 = vcombine.low %v1144_v16, %v1148_v55 }
 0x132   :  { %2953 = vperm.xlu1 %3206, %v2226_v56   ;;  %v2279_v29 = vcombine.low %v1152_v24, %v1156_v21  ;;  %v2286_v62 = vrot.slane %v2276_v57, %v3836_v37  ;;  %v4283_v39 = vand.u32 127, %v645_v22 }
 0x133   :  { %v2274_v63 = vrot.slane %v2260_v60, %v3836_v37  ;;  %v2293_v35 = vrot.slane %v2277_v61, %v3836_v37  ;;  %v2300_v36 = vrot.slane %v2278_v28, %v3836_v37 }
 0x134   :  { %v2307_v20 = vrot.slane %v2279_v29, %v3836_v37  ;;  %v3003_v6 = vadd.s32 4294967288, %v4283_v39  ;;  %v3010_v32 = vadd.s32 4294967280, %v4283_v39  ;;  %v3001_v40 = vsub.s32 %v4283_v39, %v3809_v26 }
 0x135   :  { %v2275_v2 = vcombine.low %v2267_v59, %v2274_v63  ;;  %v2308_v30 = vcombine.low %v2286_v62, %v2293_v35  ;;  %v2918_v54 = vpop.permute.xlu1 %2917  ;;  %v3017_v41 = vadd.s32 4294967272, %v4283_v39  ;;  %v3024_v43 = vadd.s32 4294967264, %v4283_v39 }
 0x136   :  { %v2309_v9 = vcombine.low %v2300_v36, %v2307_v20  ;;  %v3006_v3 = vsub.s32 %v3003_v6, %v3809_v26  ;;  %v3013_v31 = vsub.s32 %v3010_v32, %v3809_v26  ;;  %v3031_v48 = vadd.s32 4294967256, %v4283_v39 }
 0x137   :  { %2956 = vperm.xlu1 %3206, %v2275_v2   ;;  %v2316_v33 = vrot.slane %v2308_v30, %v3836_v37  ;;  %v3038_v50 = vadd.s32 4294967248, %v4283_v39  ;;  %v3002_v38 = vrot.slane %v2915_v4, %v3001_v40  ;;  %v3045_v23 = vadd.s32 4294967240, %v4283_v39 }
 0x138   :  { %v2323_v53 = vrot.slane %v2309_v9, %v3836_v37  ;;  %v3007_v46 = vrot.slane %v2918_v54, %v3006_v3  ;;  %v3020_v52 = vsub.s32 %v3017_v41, %v3809_v26  ;;  %v3027_v42 = vsub.s32 %v3024_v43, %v3809_v26 }
 0x139   :  { %v2921_v0 = vpop.permute.xlu1 %2920  ;;  %v3052_v56 = vadd.s32 4294967232, %v4283_v39  ;;  %v3034_v24 = vsub.s32 %v3031_v48, %v3809_v26  ;;  %v3041_v57 = vsub.s32 %v3038_v50, %v3809_v26  ;;  %v3059_v60 = vadd.s32 4294967224, %v4283_v39 }
 0x13a   :  { %v2324_v34 = vcombine.low %v2316_v33, %v2323_v53  ;;  %v3014_v51 = vrot.slane %v2921_v0, %v3013_v31  ;;  %v3009_v16 = vsel %vm3008_vm2, %v3007_v46, %v3002_v38  ;;  %v3048_v29 = vsub.s32 %v3045_v23, %v3809_v26 }
 0x13b   :  { %v3066_v62 = vadd.s32 4294967216, %v4283_v39  ;;  %v3073_v35 = vadd.s32 4294967208, %v4283_v39  ;;  %v3055_v2 = vsub.s32 %v3052_v56, %v3809_v26  ;;  %v3080_v30 = vadd.s32 4294967200, %v4283_v39 }
 0x13c   :  { %2959 = vperm.xlu1 %3206, %v2324_v34   ;;  %v3016_v28 = vsel %vm3015_vm9, %v3014_v51, %v3009_v16  ;;  %v3062_v33 = vsub.s32 %v3059_v60, %v3809_v26  ;;  %v3087_v53 = vadd.s32 4294967192, %v4283_v39  ;;  %v3101_v43 = vadd.s32 4294967176, %v4283_v39 }
 0x13d   :  { %v4260_v58 = vpop.permute.xlu1 %2923  ;;  %v3069_v0 = vsub.s32 %v3066_v62, %v3809_v26 }
 0x13e   :  { %v3021_v36 = vrot.slane %v4260_v58, %v3020_v52 }
 0x142   :  { %v4262_v7 = vpop.permute.xlu1 %2926 }
 0x143   :  { %v3028_v9 = vrot.slane %v4262_v7, %v3027_v42 }
 0x14a   :  { %v4264_v5 = vpop.permute.xlu1 %2929 }
 0x14b   :  { %v3035_v34 = vrot.slane %v4264_v5, %v3034_v24  ;;  %v3083_v5 = vsub.s32 %v3080_v30, %v3809_v26 }
 0x14e   :  { %v4266_v1 = vpop.permute.xlu1 %2932 }
 0x14f   :  { %v3042_v58 = vrot.slane %v4266_v1, %v3041_v57 }
 0x153   :  { %v2969_v8 = vpop.permute.xlu0 %2968 }
 0x154   :  { %v3120_v21 = vrot.slane %v2969_v8, %v3013_v31  ;;  %v3076_v8 = vsub.s32 %v3073_v35, %v3809_v26 }
 0x159   :  { %v2963_v12 = vpop.permute.xlu1 %2962 }
 0x15a   :  { %v3111_v49 = vrot.slane %v2963_v12, %v3001_v40 }
 0x15c   :  { %v4268_v13 = vpop.permute.xlu0 %2971 }
 0x15d   :  { %v3125_v20 = vrot.slane %v4268_v13, %v3020_v52  ;;  %v3094_v13 = vadd.s32 4294967184, %v4283_v39 }
 0x15f   :  { %v3097_v48 = vsub.s32 %v3094_v13, %v3809_v26 }
 0x164   :  { %v4270_v15 = vpop.permute.xlu0 %2974 }
 0x165   :  { %v3130_v4 = vrot.slane %v4270_v15, %v3027_v42  ;;  %v3090_v15 = vsub.s32 %v3087_v53, %v3809_v26  ;;  %v3104_v42 = vsub.s32 %v3101_v43, %v3809_v26 }
 0x166   :  { %v2966_v14 = vpop.permute.xlu1 %2965 }
 0x167   :  { %v3115_v47 = vrot.slane %v2966_v14, %v3006_v3  ;;  %v3023_v14 = vsel %vm3022_vm10, %v3021_v36, %v3016_v28 }
 0x168   :  { %v3030_v32 = vsel %vm3029_vm11, %v3028_v9, %v3023_v14 }
 0x169   :  { %v3116_v55 = vsel %vm3008_vm2, %v3115_v47, %v3111_v49  ;;  %v3037_v40 = vsel %vm3036_vm12, %v3035_v34, %v3030_v32 }
 0x16a   :  { %v3121_v63 = vsel %vm3015_vm9, %v3120_v21, %v3116_v55 }
 0x16b   :  { %v3126_v54 = vsel %vm3022_vm10, %v3125_v20, %v3121_v63 }
 0x16c   :  { %v4274_v10 = vpop.permute.xlu0 %2977  ;;  %v3131_v3 = vsel %vm3029_vm11, %v3130_v4, %v3126_v54 }
 0x16d   :  { %v3135_v31 = vrot.slane %v4274_v10, %v3034_v24 }
 0x172   :  { %v4272_v17 = vpop.permute.xlu1 %2935 }
 0x173   :  { %v3049_v6 = vrot.slane %v4272_v17, %v3048_v29  ;;  %v3044_v17 = vsel %vm3043_vm13, %v3042_v58, %v3037_v40 }
 0x175   :  { %v3051_v50 = vsel %vm3050_vm14, %v3049_v6, %v3044_v17 }
 0x177   :  { %v4278_v19 = vpop.permute.xlu0 %2980 }
 0x178   :  { %v3140_v46 = vrot.slane %v4278_v19, %v3041_v57 }
 0x17c   :  { %v4276_v18 = vpop.permute.xlu1 %2938 }
 0x17d   :  { %v3056_v1 = vrot.slane %v4276_v18, %v3055_v2  ;;  %v3136_v18 = vsel %vm3036_vm12, %v3135_v31, %v3131_v3 }
 0x17e   :  { %v3141_v16 = vsel %vm3043_vm13, %v3140_v46, %v3136_v18 }
 0x181   :  { %v4286_v25 = vpop.permute.xlu0 %2983 }
 0x182   :  { %v3145_v38 = vrot.slane %v4286_v25, %v3048_v29 }
 0x184   :  { %v3146_v56 = vsel %vm3050_vm14, %v3145_v38, %v3141_v16 }
 0x187   :  { %v4297_v44 = vpop.permute.xlu0 %2986 }
 0x188   :  { %v3150_v39 = vrot.slane %v4297_v44, %v3055_v2 }
 0x18a   :  { %v3151_v21 = vsel %vm3057_vm15, %v3150_v39, %v3146_v56 }
 0x18c   :  { %v4280_v11 = vpop.permute.xlu1 %2941 }
 0x18d   :  { %v3063_v41 = vrot.slane %v4280_v11, %v3062_v33  ;;  %v3058_v11 = vsel %vm3057_vm15, %v3056_v1, %v3051_v50 }
 0x18f   :  { %v3065_v19 = vsel %vm3064_vm0, %v3063_v41, %v3058_v11 }
 0x191   :  { %v4312_v59 = vpop.permute.xlu0 %2989 }
 0x196   :  { %v4288_v27 = vpop.permute.xlu1 %2944 }
 0x197   :  { %v3070_v47 = vrot.slane %v4288_v27, %v3069_v0  ;;  %v3155_v27 = vrot.slane %v4312_v59, %v3062_v33 }
 0x199   :  { %v3072_v25 = vsel %vm3071_vm1, %v3070_v47, %v3065_v19  ;;  %v3156_v26 = vsel %vm3064_vm0, %v3155_v27, %v3151_v21 }
 0x19c   :  { %v2993_v12 = vpop.permute.xlu0 %2992 }
 0x1a1   :  { %v4299_v45 = vpop.permute.xlu1 %2947 }
 0x1a2   :  { %v3077_v10 = vrot.slane %v4299_v45, %v3076_v8  ;;  %v3160_v45 = vrot.slane %v2993_v12, %v3069_v0 }
 0x1a4   :  { %v3079_v44 = vsel %vm3078_vm3, %v3077_v10, %v3072_v25  ;;  %v3161_v28 = vsel %vm3071_vm1, %v3160_v45, %v3156_v26 }
 0x1a6   :  { %v2996_v23 = vpop.permute.xlu0 %2995 }
 0x1a7   :  { %v3165_v24 = vrot.slane %v2996_v23, %v3076_v8 }
 0x1a9   :  { %v3166_v62 = vsel %vm3078_vm3, %v3165_v24, %v3161_v28 }
 0x1ab   :  { %v2951_v61 = vpop.permute.xlu1 %2950 }
 0x1ac   :  { %v3084_v49 = vrot.slane %v2951_v61, %v3083_v5 }
 0x1ae   :  { %v3086_v57 = vsel %vm3085_vm4, %v3084_v49, %v3079_v44 }
 0x1b1   :  { %v2954_v7 = vpop.permute.xlu1 %2953 }
 0x1b2   :  { %v3091_v52 = vrot.slane %v2954_v7, %v3090_v15 }
 0x1b4   :  { %v3093_v59 = vsel %vm3092_vm5, %v3091_v52, %v3086_v57 }
 0x1b6   :  { %v2957_v51 = vpop.permute.xlu1 %2956 }
 0x1b7   :  { %v3098_v55 = vrot.slane %v2957_v51, %v3097_v48 }
 0x1b9   :  { %v3100_v29 = vsel %vm3099_vm6, %v3098_v55, %v3093_v59 }
 0x1bb   :  { %v2960_v60 = vpop.permute.xlu1 %2959 }
 0x1bc   :  { %v3105_v61 = vrot.slane %v2960_v60, %v3104_v42 }
 0x1be   :  { %v3107_v63 = vsel %vm3106_vm7, %v3105_v61, %v3100_v29 }
 0x1bf   :  { %v3167_v35 = vcombine.low %v3107_v63, %v3166_v62 }
 0x1c1   :  { %v3174_v36 = vrot.slane %v3167_v35, %v3836_v37 }
 0x1c3   :  { %v3181_v20 = vrot.slane %v3174_v36, %v3836_v37 }
 0x1c5   :  { %3187 = vst.msk [vmem:[#allocation2] sm:$0x3] %vm3185_vm8, %v3181_v20 }
 0x1c6   :  { %3218 = shalt.err (!%p3215_p4)
}
 0x1c7   :  { %s3219_s12 = scalar_lea.hbm %s4384_s2, 32 }
 0x1c8   :  { %p3220_p5 = scmp.ne.s32.totalorder %s4384_s2, %s3219_s12  ;;  %p3223_p6 = scmp.lt.u32.totalorder %s3219_s12, %s4384_s2 }
 0x1ca   :  { %p3225_p7 = pnand %p3223_p6, %p3220_p5 }
 0x1cc   :  { %3228 = shalt.err (!%p3225_p7)
}
 0x1cd   :  { %3197 = dma.vmem_to_hbm [thread:$0]  %s3195_s8, 32, %s4384_s2, [#allocation3]  }
 0x1ce   :  { %3229 = dma.done.wait [#allocation3], 32  }
 0x1cf   :  { %3230 = vsyncadd [#allocation3], 4294967264 }
 0x1d0   :  { %3201 = vsyncpa [#allocation3], 1 }

</bundles_post_ra>
